<compile_context>
chip_gen: v7x
topology: tpu7x:2x2x1
jax: 0.10.0
libtpu: 0.0.40
codegen_flags: <defaults>
</compile_context>

<pallas_src>
import functools

import jax
import jax.numpy as jnp
from jax import lax
from jax.experimental import pallas as pl
from jax.experimental.pallas import tpu as pltpu


def _round_up(x, m):
    return (x + m - 1) // m * m


def _tpu_generation():
    """(is_v5e, is_v7x, physical_vmem_bytes) with safe fallbacks."""
    kind = ""
    try:
        dev = jax.devices()[0]
        if dev.platform == "tpu":
            kind = dev.device_kind.lower()
    except Exception:
        pass
    is_v5e = ("v5e" in kind) or ("v5 lite" in kind) or ("v5litepod" in kind)
    is_v7 = "v7" in kind
    phys = (64 << 20) if is_v7 else (128 << 20)
    try:
        phys = min(phys, int(pltpu.get_tpu_info().vmem_capacity_bytes))
    except Exception:
        pass
    return is_v5e, is_v7, phys


def _coatt_kernel(va_ref, vb_ref, w_ref, g_ref, va_out_ref, vb_out_ref, s_ref,
                  *, num_valid, block_b, sum_row, bf16_exp, unroll):
    """block_b batch elements of CoAttNet co-attention.

    va_ref, vb_ref : (block_b, C_pad, HW_pad) bf16. Row `sum_row` is an
                     all-ones channel (1 on valid spatial positions, 0 on
                     padding) so the attention matmuls also yield the softmax
                     denominators in lane-dense (1, HW) layout.
    w_ref          : (C_pad, C_pad) bf16  nn.Linear weight (out, in)
    g_ref          : (C_pad, 1)    f32    1x1 gate conv weight (0 beyond C)
    va_out_ref     : (block_b, C_pad, HW_pad) bf16  gated Va_output_att
    vb_out_ref     : (block_b, C_pad, HW_pad) bf16  gated Vb_output_att
    s_ref          : (HW_pad, HW_pad) f32 VMEM scratch staging S
    """
    hw_pad = s_ref.shape[-1]

    # Resident weights: loaded once per grid step, reused for all items.
    w_bf = w_ref[...]                               # (C_pad, C_pad) bf16
    g = g_ref[...]                                  # (C_pad, 1)     f32

    exp_dtype = jnp.bfloat16 if bf16_exp else jnp.float32

    pad = num_valid < hw_pad
    if pad:
        # Hoisted 1-D padding biases, applied as two broadcast adds per item.
        # Only the max subtraction needs them: the zero-padded channels of
        # Va / Vb / the ones-row already exclude padded positions from every
        # sum and matmul, so the softmax ratio is exact regardless of m.
        neg = jnp.float32(-1e30)
        col_bias = jnp.where(
            lax.broadcasted_iota(jnp.int32, (1, hw_pad), 1) >= num_valid,
            neg, jnp.float32(0.0))
        row_bias = jnp.where(
            lax.broadcasted_iota(jnp.int32, (hw_pad, 1), 0) >= num_valid,
            neg, jnp.float32(0.0))

    def body(b):
        va_bf = va_ref[b]                           # (C_pad, HW_pad) bf16
        vb_bf = vb_ref[b]

        # S[i, j] = sum_c' (W @ Va)[c', i] * Vb[c', j]   (bf16 MXU, f32 acc)
        tmp = jnp.dot(w_bf, va_bf, preferred_element_type=jnp.float32)
        s = lax.dot_general(tmp.astype(jnp.bfloat16), vb_bf,
                            (((0,), (0,)), ((), ())),
                            preferred_element_type=jnp.float32)   # (HW, HW)
        if pad:
            s = s + col_bias + row_bias
        s_ref[...] = s                              # stage for the 2nd pass

        # ---- Row-softmax path (consumes in-register s) -> Vb_att ----------
        #   Vb_att[c, i] = sum_j Va[c, j] * exp(S[i,j]-m1[i]) / rowsum[i]
        m1 = jnp.max(s, axis=1, keepdims=True)                        # (HW,1)
        e1 = jnp.exp((s - m1).astype(exp_dtype)).astype(jnp.bfloat16)
        # MXU: row `sum_row` of vb_un is rowsum(E1), already (1, HW) layout.
        vb_un = lax.dot_general(va_bf, e1, (((1,), (1,)), ((), ())),
                                preferred_element_type=jnp.float32)  # (C_pad,HW)
        inv1 = pl.reciprocal(vb_un[sum_row:sum_row + 1, :], approx=True)
        gate1 = jnp.sum(g * vb_un, axis=0, keepdims=True)             # (1, HW)
        scale1 = inv1 * jax.nn.sigmoid(gate1 * inv1)
        vb_out_ref[b] = (vb_un * scale1).astype(vb_out_ref.dtype)

        # ---- Column-softmax path (reloads S from VMEM) -> Va_att ----------
        #   Va_att[c, j] = sum_i Vb[c, i] * exp(S[i,j]-m2[j]) / colsum[j]
        s2 = s_ref[...]
        m2 = jnp.max(s2, axis=0, keepdims=True)                       # (1, HW)
        e2 = jnp.exp((s2 - m2).astype(exp_dtype)).astype(jnp.bfloat16)
        va_un = jnp.dot(vb_bf, e2, preferred_element_type=jnp.float32)
        inv2 = pl.reciprocal(va_un[sum_row:sum_row + 1, :], approx=True)
        gate2 = jnp.sum(g * va_un, axis=0, keepdims=True)
        scale2 = inv2 * jax.nn.sigmoid(gate2 * inv2)
        va_out_ref[b] = (va_un * scale2).astype(va_out_ref.dtype)

    if unroll:
        for b in range(block_b):   # static unroll: scheduler overlaps items
            body(b)
    else:
        pl.loop(0, block_b)(body)


@functools.partial(jax.jit, static_argnames=("input_size",))
def coattnet_forward(Va_output, Vb_output, w_linear, w_gate, input_size):
    """CoAttNet.forward. Inputs are NCHW; returns (Va_att, Vb_att, input_size)."""
    B, C, H, W = Va_output.shape
    HW = H * W
    # +1 channel: an all-ones row whose MXU output row is the softmax
    # denominator; padded to a bf16-friendly sublane multiple of 16.
    C_pad = _round_up(C + 1, 16)
    sum_row = C
    HW_pad = _round_up(HW, 128)   # lane-dense multiple

    is_v5e, is_v7, phys_vmem = _tpu_generation()

    def _prep(x):
        flat = x.reshape(B, C, HW).astype(jnp.bfloat16)
        ones = jnp.ones((B, 1, HW), jnp.bfloat16)
        flat = jnp.concatenate([flat, ones], axis=1)
        return jnp.pad(flat, ((0, 0), (0, C_pad - C - 1), (0, HW_pad - HW)))

    va_flat = _prep(Va_output)
    vb_flat = _prep(Vb_output)
    wl = jnp.pad(w_linear.astype(jnp.bfloat16),
                 ((0, C_pad - C), (0, C_pad - C)))
    g = jnp.pad(w_gate.reshape(C, 1).astype(jnp.float32),
                ((0, C_pad - C), (0, 0)))

    # --- generation-aware VMEM budget and block_b choice -------------------
    budget = (phys_vmem * 3) // 4          # ~96 MiB v5e/v6e, ~48 MiB v7x
    # Live HW^2 working set: S scratch (f32) + in-flight S / E / exp temps.
    fixed = 16 * HW_pad * HW_pad
    # 2 bf16 inputs + 2 bf16 outputs per batch item, double-buffered.
    per_b_io = 4 * C_pad * HW_pad * 2 * 2

    max_block = B
    if is_v7 and B >= 2:
        max_block = max(B // 2, 1)         # keep >= 2 grid steps for the 2 TCs
    block_b = 1
    for bb in (8, 4, 2, 1):
        if bb <= max_block and B % bb == 0 and fixed + bb * per_b_io <= budget:
            block_b = bb
            break
    grid_b = B // block_b

    est = fixed + block_b * per_b_io + (C_pad * C_pad * 2 + C_pad * 4) * 2
    vmem_limit = int(min(max(est + (8 << 20), 32 << 20), budget))

    unroll = bool(block_b <= 4 and HW_pad <= 512)
    bf16_exp = not is_v5e              # v5e EUP has no bf16; v6e/v7x do

    batch_spec = pl.BlockSpec((block_b, C_pad, HW_pad), lambda b: (b, 0, 0))
    kernel = functools.partial(_coatt_kernel, num_valid=HW, block_b=block_b,
                               sum_row=sum_row, bf16_exp=bf16_exp,
                               unroll=unroll)

    va_att_flat, vb_att_flat = pl.pallas_call(
        kernel,
        out_shape=(
            jax.ShapeDtypeStruct((B, C_pad, HW_pad), jnp.bfloat16),
            jax.ShapeDtypeStruct((B, C_pad, HW_pad), jnp.bfloat16),
        ),
        grid_spec=pltpu.PrefetchScalarGridSpec(
            num_scalar_prefetch=0,
            grid=(grid_b,),
            in_specs=[
                batch_spec,                                      # Va_flat bf16
                batch_spec,                                      # Vb_flat bf16
                pl.BlockSpec((C_pad, C_pad), lambda b: (0, 0)),  # linear weight
                pl.BlockSpec((C_pad, 1), lambda b: (0, 0)),      # gate weight
            ],
            out_specs=[batch_spec, batch_spec],
            scratch_shapes=[pltpu.VMEM((HW_pad, HW_pad), jnp.float32)],
        ),
        compiler_params=pltpu.CompilerParams(
            dimension_semantics=("parallel",),
            vmem_limit_bytes=vmem_limit),
    )(va_flat, vb_flat, wl, g)

    out_dtype = Va_output.dtype
    Va_att = va_att_flat[:, :C, :HW].reshape(B, C, H, W).astype(out_dtype)
    Vb_att = vb_att_flat[:, :C, :HW].reshape(B, C, H, W).astype(out_dtype)

    Va_att = jnp.concatenate([Va_att, Va_output], axis=1)
    Vb_att = jnp.concatenate([Vb_att, Vb_output], axis=1)
    return Va_att, Vb_att, input_size


def _reference_forward(Va_output, Vb_output, w_linear, w_gate):
    """Pure-JAX f32 reference mirroring the PyTorch module (for validation)."""
    B, C, H, W = Va_output.shape
    HW = H * W
    va = Va_output.reshape(B, C, HW)
    vb = Vb_output.reshape(B, C, HW)
    va_t = jnp.swapaxes(va, 1, 2)                      # (B, HW, C)
    va_corr = va_t @ w_linear.T                        # (B, HW, C)
    S = va_corr @ vb                                   # (B, HW, HW)
    S_c = jax.nn.softmax(S, axis=1)
    S_r = jax.nn.softmax(jnp.swapaxes(S, 1, 2), axis=1)
    vb_att = (va @ S_r).reshape(B, C, H, W)
    va_att = (vb @ S_c).reshape(B, C, H, W)
    va_mask = jax.nn.sigmoid(jnp.einsum("c,bchw->bhw", w_gate, va_att))[:, None]
    vb_mask = jax.nn.sigmoid(jnp.einsum("c,bchw->bhw", w_gate, vb_att))[:, None]
    va_att = va_att * va_mask
    vb_att = vb_att * vb_mask
    return (jnp.concatenate([va_att, Va_output], 1),
            jnp.concatenate([vb_att, Vb_output], 1))


if __name__ == "__main__":
    # Small, deterministic problem consistent with the module's forward.
    B, C, H, W = 2, 32, 8, 8
    input_size = (H * 4, W * 4)

    key = jax.random.PRNGKey(0)
    k_va, k_vb, k_lin, k_gate = jax.random.split(key, 4)
    Va = jax.random.normal(k_va, (B, C, H, W), dtype=jnp.float32)
    Vb = jax.random.normal(k_vb, (B, C, H, W), dtype=jnp.float32)
    # nn.Linear(C, C, bias=False) weight (out, in); deterministic synthetic init.
    w_linear = jax.random.normal(k_lin, (C, C), dtype=jnp.float32) * 0.05
    # nn.Conv2d(C, 1, 1, bias=False) weight, init normal_(0, 0.01) in the module.
    w_gate = jax.random.normal(k_gate, (C,), dtype=jnp.float32) * 0.01

    Va_att, Vb_att, out_size = coattnet_forward(Va, Vb, w_linear, w_gate,
                                                input_size)
    jax.block_until_ready((Va_att, Vb_att))

    assert Va_att.shape == (B, 2 * C, H, W)
    assert Vb_att.shape == (B, 2 * C, H, W)
    assert out_size == input_size

    ref_a, ref_b = _reference_forward(Va, Vb, w_linear, w_gate)
    # bf16 MXU operands / bf16 exp / bf16 outputs + approx reciprocal
    # -> loosened tolerance vs the f32 reference.
    assert jnp.allclose(Va_att, ref_a, rtol=5e-2, atol=5e-2)
    assert jnp.allclose(Vb_att, ref_b, rtol=5e-2, atol=5e-2)

    print("KERNEL_OK")
</pallas_src>

<mosaic_0001>
module attributes {stable_mosaic.version = 11 : i64} {
  func.func @_coatt_kernel(%arg0: i32, %arg1: memref<2x48x128xbf16, #tpu.memory_space<vmem>>, %arg2: memref<2x48x128xbf16, #tpu.memory_space<vmem>>, %arg3: memref<48x48xbf16, #tpu.memory_space<vmem>>, %arg4: memref<48x1xf32, #tpu.memory_space<vmem>>, %arg5: memref<2x48x128xbf16, #tpu.memory_space<vmem>>, %arg6: memref<2x48x128xbf16, #tpu.memory_space<vmem>>, %arg7: memref<128x128xf32, #tpu.memory_space<vmem>>) attributes {dimension_semantics = [#tpu.dimension_semantics<parallel>], iteration_bounds = array<i64: 1>, scalar_prefetch = 0 : i64, scratch_operands = 1 : i64, tpu.core_type = #tpu.core_type<tc>, window_params = [{transform_indices = @transform_0, window_bounds = array<i64: 2, 48, 128>}, {transform_indices = @transform_1, window_bounds = array<i64: 2, 48, 128>}, {pipeline_mode = #tpu.pipeline_mode<synchronous>, transform_indices = @transform_2, window_bounds = array<i64: 48, 48>}, {pipeline_mode = #tpu.pipeline_mode<synchronous>, transform_indices = @transform_3, window_bounds = array<i64: 48, 1>}, {transform_indices = @transform_4, window_bounds = array<i64: 2, 48, 128>}, {transform_indices = @transform_5, window_bounds = array<i64: 2, 48, 128>}]} {
    %c0 = arith.constant 0 : index
    %c0_0 = arith.constant 0 : index
    %0 = vector.load %arg3[%c0, %c0_0] : memref<48x48xbf16, #tpu.memory_space<vmem>>, vector<48x48xbf16>
    %c0_1 = arith.constant 0 : index
    %c0_2 = arith.constant 0 : index
    %1 = vector.load %arg4[%c0_1, %c0_2] : memref<48x1xf32, #tpu.memory_space<vmem>>, vector<48x1xf32>
    %2 = tpu.iota {dimensions = array<i32: 1>} : vector<1x128xi32>
    %c64_i32 = arith.constant 64 : i32
    %3 = vector.broadcast %c64_i32 : i32 to vector<1x128xi32>
    %4 = arith.cmpi sge, %2, %3 : vector<1x128xi32>
    %cst = arith.constant -1.000000e+30 : f32
    %cst_3 = arith.constant 0.000000e+00 : f32
    %5 = vector.broadcast %cst : f32 to vector<1x128xf32>
    %6 = vector.broadcast %cst_3 : f32 to vector<1x128xf32>
    %7 = arith.select %4, %5, %6 : vector<1x128xi1>, vector<1x128xf32>
    %8 = tpu.iota {dimensions = array<i32: 0>} : vector<128x1xi32>
    %c64_i32_4 = arith.constant 64 : i32
    %9 = vector.broadcast %c64_i32_4 : i32 to vector<128x1xi32>
    %10 = arith.cmpi sge, %8, %9 : vector<128x1xi32>
    %cst_5 = arith.constant -1.000000e+30 : f32
    %cst_6 = arith.constant 0.000000e+00 : f32
    %11 = vector.broadcast %cst_5 : f32 to vector<128x1xf32>
    %12 = vector.broadcast %cst_6 : f32 to vector<128x1xf32>
    %13 = arith.select %10, %11, %12 : vector<128x1xi1>, vector<128x1xf32>
    %c0_7 = arith.constant 0 : index
    %c0_8 = arith.constant 0 : index
    %c0_9 = arith.constant 0 : index
    %14 = vector.load %arg1[%c0_7, %c0_8, %c0_9] : memref<2x48x128xbf16, #tpu.memory_space<vmem>>, vector<1x48x128xbf16>
    %15 = vector.shape_cast %14 : vector<1x48x128xbf16> to vector<48x128xbf16>
    %c0_10 = arith.constant 0 : index
    %c0_11 = arith.constant 0 : index
    %c0_12 = arith.constant 0 : index
    %16 = vector.load %arg2[%c0_10, %c0_11, %c0_12] : memref<2x48x128xbf16, #tpu.memory_space<vmem>>, vector<1x48x128xbf16>
    %17 = vector.shape_cast %16 : vector<1x48x128xbf16> to vector<48x128xbf16>
    %cst_13 = arith.constant dense<0.000000e+00> : vector<48x128xf32>
    %18 = tpu.matmul %0, %15, %cst_13 {dimension_numbers = #tpu.dot_dimension_numbers<[1], [0], [0], [1], [0, 0, 1, 1], [], []>} : vector<48x48xbf16>, vector<48x128xbf16>, vector<48x128xf32> -> vector<48x128xf32>
    %19 = arith.truncf %18 : vector<48x128xf32> to vector<48x128xbf16>
    %cst_14 = arith.constant dense<0.000000e+00> : vector<128x128xf32>
    %20 = tpu.matmul %19, %17, %cst_14 {dimension_numbers = #tpu.dot_dimension_numbers<[0], [0], [1], [1], [0, 1, 1, 1], [], []>} : vector<48x128xbf16>, vector<48x128xbf16>, vector<128x128xf32> -> vector<128x128xf32>
    %21 = vector.broadcast %7 : vector<1x128xf32> to vector<128x128xf32>
    %22 = arith.addf %20, %21 : vector<128x128xf32>
    %23 = vector.broadcast %13 : vector<128x1xf32> to vector<128x128xf32>
    %24 = arith.addf %22, %23 : vector<128x128xf32>
    %c0_15 = arith.constant 0 : index
    %c0_16 = arith.constant 0 : index
    %25 = vector.load %arg7[%c0_15, %c0_16] : memref<128x128xf32, #tpu.memory_space<vmem>>, vector<128x128xf32>
    tpu.vector_store %arg7[%c0_15, %c0_16], %24 {strides = array<i32>} : memref<128x128xf32, #tpu.memory_space<vmem>>, vector<128x128xf32>,
    %cst_17 = arith.constant dense<0xFF800000> : vector<128xf32>
    %26 = vector.multi_reduction <maximumf>, %24, %cst_17 [1] : vector<128x128xf32> to vector<128xf32>
    %27 = vector.shape_cast %26 : vector<128xf32> to vector<128x1xf32>
    %28 = vector.broadcast %27 : vector<128x1xf32> to vector<128x128xf32>
    %29 = arith.subf %24, %28 : vector<128x128xf32>
    %30 = arith.truncf %29 : vector<128x128xf32> to vector<128x128xbf16>
    %31 = math.exp %30 : vector<128x128xbf16>
    %cst_18 = arith.constant dense<0.000000e+00> : vector<48x128xf32>
    %32 = tpu.matmul %15, %31, %cst_18 {dimension_numbers = #tpu.dot_dimension_numbers<[1], [1], [0], [0], [0, 0, 1, 0], [], []>} : vector<48x128xbf16>, vector<128x128xbf16>, vector<48x128xf32> -> vector<48x128xf32>
    %33 = vector.extract_strided_slice %32 {offsets = [32, 0], sizes = [1, 128], strides = [1, 1]} : vector<48x128xf32> to vector<1x128xf32>
    %34 = tpu.reciprocal %33 {approx = true} : vector<1x128xf32> -> vector<1x128xf32>
    %35 = vector.broadcast %1 : vector<48x1xf32> to vector<48x128xf32>
    %36 = arith.mulf %35, %32 : vector<48x128xf32>
    %cst_19 = arith.constant dense<0.000000e+00> : vector<128xf32>
    %37 = vector.multi_reduction <add>, %36, %cst_19 [0] : vector<48x128xf32> to vector<128xf32>
    %38 = vector.shape_cast %37 : vector<128xf32> to vector<1x128xf32>
    %39 = arith.mulf %38, %34 : vector<1x128xf32>
    %40 = arith.negf %39 : vector<1x128xf32>
    %41 = math.exp %40 : vector<1x128xf32>
    %cst_20 = arith.constant 1.000000e+00 : f32
    %42 = vector.broadcast %cst_20 : f32 to vector<1x128xf32>
    %43 = arith.addf %42, %41 : vector<1x128xf32>
    %44 = arith.divf %42, %43 : vector<1x128xf32>
    %45 = arith.mulf %34, %44 : vector<1x128xf32>
    %46 = vector.broadcast %45 : vector<1x128xf32> to vector<48x128xf32>
    %47 = arith.mulf %32, %46 : vector<48x128xf32>
    %48 = arith.truncf %47 : vector<48x128xf32> to vector<48x128xbf16>
    %c0_21 = arith.constant 0 : index
    %c0_22 = arith.constant 0 : index
    %c0_23 = arith.constant 0 : index
    %49 = vector.load %arg6[%c0_21, %c0_22, %c0_23] : memref<2x48x128xbf16, #tpu.memory_space<vmem>>, vector<1x48x128xbf16>
    %50 = vector.shape_cast %49 : vector<1x48x128xbf16> to vector<48x128xbf16>
    %51 = vector.shape_cast %48 : vector<48x128xbf16> to vector<1x48x128xbf16>
    tpu.vector_store %arg6[%c0_21, %c0_22, %c0_23], %51 {strides = array<i32>} : memref<2x48x128xbf16, #tpu.memory_space<vmem>>, vector<1x48x128xbf16>,
    %c0_24 = arith.constant 0 : index
    %c0_25 = arith.constant 0 : index
    %52 = vector.load %arg7[%c0_24, %c0_25] : memref<128x128xf32, #tpu.memory_space<vmem>>, vector<128x128xf32>
    %cst_26 = arith.constant dense<0xFF800000> : vector<128xf32>
    %53 = vector.multi_reduction <maximumf>, %52, %cst_26 [0] : vector<128x128xf32> to vector<128xf32>
    %54 = vector.shape_cast %53 : vector<128xf32> to vector<1x128xf32>
    %55 = vector.broadcast %54 : vector<1x128xf32> to vector<128x128xf32>
    %56 = arith.subf %52, %55 : vector<128x128xf32>
    %57 = arith.truncf %56 : vector<128x128xf32> to vector<128x128xbf16>
    %58 = math.exp %57 : vector<128x128xbf16>
    %cst_27 = arith.constant dense<0.000000e+00> : vector<48x128xf32>
    %59 = tpu.matmul %17, %58, %cst_27 {dimension_numbers = #tpu.dot_dimension_numbers<[1], [0], [0], [1], [0, 0, 1, 1], [], []>} : vector<48x128xbf16>, vector<128x128xbf16>, vector<48x128xf32> -> vector<48x128xf32>
    %60 = vector.extract_strided_slice %59 {offsets = [32, 0], sizes = [1, 128], strides = [1, 1]} : vector<48x128xf32> to vector<1x128xf32>
    %61 = tpu.reciprocal %60 {approx = true} : vector<1x128xf32> -> vector<1x128xf32>
    %62 = vector.broadcast %1 : vector<48x1xf32> to vector<48x128xf32>
    %63 = arith.mulf %62, %59 : vector<48x128xf32>
    %cst_28 = arith.constant dense<0.000000e+00> : vector<128xf32>
    %64 = vector.multi_reduction <add>, %63, %cst_28 [0] : vector<48x128xf32> to vector<128xf32>
    %65 = vector.shape_cast %64 : vector<128xf32> to vector<1x128xf32>
    %66 = arith.mulf %65, %61 : vector<1x128xf32>
    %67 = arith.negf %66 : vector<1x128xf32>
    %68 = math.exp %67 : vector<1x128xf32>
    %cst_29 = arith.constant 1.000000e+00 : f32
    %69 = vector.broadcast %cst_29 : f32 to vector<1x128xf32>
    %70 = arith.addf %69, %68 : vector<1x128xf32>
    %71 = arith.divf %69, %70 : vector<1x128xf32>
    %72 = arith.mulf %61, %71 : vector<1x128xf32>
    %73 = vector.broadcast %72 : vector<1x128xf32> to vector<48x128xf32>
    %74 = arith.mulf %59, %73 : vector<48x128xf32>
    %75 = arith.truncf %74 : vector<48x128xf32> to vector<48x128xbf16>
    %c0_30 = arith.constant 0 : index
    %c0_31 = arith.constant 0 : index
    %c0_32 = arith.constant 0 : index
    %76 = vector.load %arg5[%c0_30, %c0_31, %c0_32] : memref<2x48x128xbf16, #tpu.memory_space<vmem>>, vector<1x48x128xbf16>
    %77 = vector.shape_cast %76 : vector<1x48x128xbf16> to vector<48x128xbf16>
    %78 = vector.shape_cast %75 : vector<48x128xbf16> to vector<1x48x128xbf16>
    tpu.vector_store %arg5[%c0_30, %c0_31, %c0_32], %78 {strides = array<i32>} : memref<2x48x128xbf16, #tpu.memory_space<vmem>>, vector<1x48x128xbf16>,
    %c1 = arith.constant 1 : index
    %c0_33 = arith.constant 0 : index
    %c0_34 = arith.constant 0 : index
    %79 = vector.load %arg1[%c1, %c0_33, %c0_34] : memref<2x48x128xbf16, #tpu.memory_space<vmem>>, vector<1x48x128xbf16>
    %80 = vector.shape_cast %79 : vector<1x48x128xbf16> to vector<48x128xbf16>
    %c1_35 = arith.constant 1 : index
    %c0_36 = arith.constant 0 : index
    %c0_37 = arith.constant 0 : index
    %81 = vector.load %arg2[%c1_35, %c0_36, %c0_37] : memref<2x48x128xbf16, #tpu.memory_space<vmem>>, vector<1x48x128xbf16>
    %82 = vector.shape_cast %81 : vector<1x48x128xbf16> to vector<48x128xbf16>
    %cst_38 = arith.constant dense<0.000000e+00> : vector<48x128xf32>
    %83 = tpu.matmul %0, %80, %cst_38 {dimension_numbers = #tpu.dot_dimension_numbers<[1], [0], [0], [1], [0, 0, 1, 1], [], []>} : vector<48x48xbf16>, vector<48x128xbf16>, vector<48x128xf32> -> vector<48x128xf32>
    %84 = arith.truncf %83 : vector<48x128xf32> to vector<48x128xbf16>
    %cst_39 = arith.constant dense<0.000000e+00> : vector<128x128xf32>
    %85 = tpu.matmul %84, %82, %cst_39 {dimension_numbers = #tpu.dot_dimension_numbers<[0], [0], [1], [1], [0, 1, 1, 1], [], []>} : vector<48x128xbf16>, vector<48x128xbf16>, vector<128x128xf32> -> vector<128x128xf32>
    %86 = vector.broadcast %7 : vector<1x128xf32> to vector<128x128xf32>
    %87 = arith.addf %85, %86 : vector<128x128xf32>
    %88 = vector.broadcast %13 : vector<128x1xf32> to vector<128x128xf32>
    %89 = arith.addf %87, %88 : vector<128x128xf32>
    %c0_40 = arith.constant 0 : index
    %c0_41 = arith.constant 0 : index
    %90 = vector.load %arg7[%c0_40, %c0_41] : memref<128x128xf32, #tpu.memory_space<vmem>>, vector<128x128xf32>
    tpu.vector_store %arg7[%c0_40, %c0_41], %89 {strides = array<i32>} : memref<128x128xf32, #tpu.memory_space<vmem>>, vector<128x128xf32>,
    %cst_42 = arith.constant dense<0xFF800000> : vector<128xf32>
    %91 = vector.multi_reduction <maximumf>, %89, %cst_42 [1] : vector<128x128xf32> to vector<128xf32>
    %92 = vector.shape_cast %91 : vector<128xf32> to vector<128x1xf32>
    %93 = vector.broadcast %92 : vector<128x1xf32> to vector<128x128xf32>
    %94 = arith.subf %89, %93 : vector<128x128xf32>
    %95 = arith.truncf %94 : vector<128x128xf32> to vector<128x128xbf16>
    %96 = math.exp %95 : vector<128x128xbf16>
    %cst_43 = arith.constant dense<0.000000e+00> : vector<48x128xf32>
    %97 = tpu.matmul %80, %96, %cst_43 {dimension_numbers = #tpu.dot_dimension_numbers<[1], [1], [0], [0], [0, 0, 1, 0], [], []>} : vector<48x128xbf16>, vector<128x128xbf16>, vector<48x128xf32> -> vector<48x128xf32>
    %98 = vector.extract_strided_slice %97 {offsets = [32, 0], sizes = [1, 128], strides = [1, 1]} : vector<48x128xf32> to vector<1x128xf32>
    %99 = tpu.reciprocal %98 {approx = true} : vector<1x128xf32> -> vector<1x128xf32>
    %100 = vector.broadcast %1 : vector<48x1xf32> to vector<48x128xf32>
    %101 = arith.mulf %100, %97 : vector<48x128xf32>
    %cst_44 = arith.constant dense<0.000000e+00> : vector<128xf32>
    %102 = vector.multi_reduction <add>, %101, %cst_44 [0] : vector<48x128xf32> to vector<128xf32>
    %103 = vector.shape_cast %102 : vector<128xf32> to vector<1x128xf32>
    %104 = arith.mulf %103, %99 : vector<1x128xf32>
    %105 = arith.negf %104 : vector<1x128xf32>
    %106 = math.exp %105 : vector<1x128xf32>
    %cst_45 = arith.constant 1.000000e+00 : f32
    %107 = vector.broadcast %cst_45 : f32 to vector<1x128xf32>
    %108 = arith.addf %107, %106 : vector<1x128xf32>
    %109 = arith.divf %107, %108 : vector<1x128xf32>
    %110 = arith.mulf %99, %109 : vector<1x128xf32>
    %111 = vector.broadcast %110 : vector<1x128xf32> to vector<48x128xf32>
    %112 = arith.mulf %97, %111 : vector<48x128xf32>
    %113 = arith.truncf %112 : vector<48x128xf32> to vector<48x128xbf16>
    %c1_46 = arith.constant 1 : index
    %c0_47 = arith.constant 0 : index
    %c0_48 = arith.constant 0 : index
    %114 = vector.load %arg6[%c1_46, %c0_47, %c0_48] : memref<2x48x128xbf16, #tpu.memory_space<vmem>>, vector<1x48x128xbf16>
    %115 = vector.shape_cast %114 : vector<1x48x128xbf16> to vector<48x128xbf16>
    %116 = vector.shape_cast %113 : vector<48x128xbf16> to vector<1x48x128xbf16>
    tpu.vector_store %arg6[%c1_46, %c0_47, %c0_48], %116 {strides = array<i32>} : memref<2x48x128xbf16, #tpu.memory_space<vmem>>, vector<1x48x128xbf16>,
    %c0_49 = arith.constant 0 : index
    %c0_50 = arith.constant 0 : index
    %117 = vector.load %arg7[%c0_49, %c0_50] : memref<128x128xf32, #tpu.memory_space<vmem>>, vector<128x128xf32>
    %cst_51 = arith.constant dense<0xFF800000> : vector<128xf32>
    %118 = vector.multi_reduction <maximumf>, %117, %cst_51 [0] : vector<128x128xf32> to vector<128xf32>
    %119 = vector.shape_cast %118 : vector<128xf32> to vector<1x128xf32>
    %120 = vector.broadcast %119 : vector<1x128xf32> to vector<128x128xf32>
    %121 = arith.subf %117, %120 : vector<128x128xf32>
    %122 = arith.truncf %121 : vector<128x128xf32> to vector<128x128xbf16>
    %123 = math.exp %122 : vector<128x128xbf16>
    %cst_52 = arith.constant dense<0.000000e+00> : vector<48x128xf32>
    %124 = tpu.matmul %82, %123, %cst_52 {dimension_numbers = #tpu.dot_dimension_numbers<[1], [0], [0], [1], [0, 0, 1, 1], [], []>} : vector<48x128xbf16>, vector<128x128xbf16>, vector<48x128xf32> -> vector<48x128xf32>
    %125 = vector.extract_strided_slice %124 {offsets = [32, 0], sizes = [1, 128], strides = [1, 1]} : vector<48x128xf32> to vector<1x128xf32>
    %126 = tpu.reciprocal %125 {approx = true} : vector<1x128xf32> -> vector<1x128xf32>
    %127 = vector.broadcast %1 : vector<48x1xf32> to vector<48x128xf32>
    %128 = arith.mulf %127, %124 : vector<48x128xf32>
    %cst_53 = arith.constant dense<0.000000e+00> : vector<128xf32>
    %129 = vector.multi_reduction <add>, %128, %cst_53 [0] : vector<48x128xf32> to vector<128xf32>
    %130 = vector.shape_cast %129 : vector<128xf32> to vector<1x128xf32>
    %131 = arith.mulf %130, %126 : vector<1x128xf32>
    %132 = arith.negf %131 : vector<1x128xf32>
    %133 = math.exp %132 : vector<1x128xf32>
    %cst_54 = arith.constant 1.000000e+00 : f32
    %134 = vector.broadcast %cst_54 : f32 to vector<1x128xf32>
    %135 = arith.addf %134, %133 : vector<1x128xf32>
    %136 = arith.divf %134, %135 : vector<1x128xf32>
    %137 = arith.mulf %126, %136 : vector<1x128xf32>
    %138 = vector.broadcast %137 : vector<1x128xf32> to vector<48x128xf32>
    %139 = arith.mulf %124, %138 : vector<48x128xf32>
    %140 = arith.truncf %139 : vector<48x128xf32> to vector<48x128xbf16>
    %c1_55 = arith.constant 1 : index
    %c0_56 = arith.constant 0 : index
    %c0_57 = arith.constant 0 : index
    %141 = vector.load %arg5[%c1_55, %c0_56, %c0_57] : memref<2x48x128xbf16, #tpu.memory_space<vmem>>, vector<1x48x128xbf16>
    %142 = vector.shape_cast %141 : vector<1x48x128xbf16> to vector<48x128xbf16>
    %143 = vector.shape_cast %140 : vector<48x128xbf16> to vector<1x48x128xbf16>
    tpu.vector_store %arg5[%c1_55, %c0_56, %c0_57], %143 {strides = array<i32>} : memref<2x48x128xbf16, #tpu.memory_space<vmem>>, vector<1x48x128xbf16>,
    return
  }
  func.func @transform_0(%arg0: i32) -> (i32, i32, i32) {
    %c0_i32 = arith.constant 0 : i32
    %c0_i32_0 = arith.constant 0 : i32
    %c0_i32_1 = arith.constant 0 : i32
    return %arg0, %c0_i32, %c0_i32_0 : i32, i32, i32
  }
  func.func @transform_1(%arg0: i32) -> (i32, i32, i32) {
    %c0_i32 = arith.constant 0 : i32
    %c0_i32_0 = arith.constant 0 : i32
    %c0_i32_1 = arith.constant 0 : i32
    return %arg0, %c0_i32, %c0_i32_0 : i32, i32, i32
  }
  func.func @transform_2(%arg0: i32) -> (i32, i32) {
    %c0_i32 = arith.constant 0 : i32
    %c0_i32_0 = arith.constant 0 : i32
    %c0_i32_1 = arith.constant 0 : i32
    return %c0_i32, %c0_i32_0 : i32, i32
  }
  func.func @transform_3(%arg0: i32) -> (i32, i32) {
    %c0_i32 = arith.constant 0 : i32
    %c0_i32_0 = arith.constant 0 : i32
    %c0_i32_1 = arith.constant 0 : i32
    return %c0_i32, %c0_i32_0 : i32, i32
  }
  func.func @transform_4(%arg0: i32) -> (i32, i32, i32) {
    %c0_i32 = arith.constant 0 : i32
    %c0_i32_0 = arith.constant 0 : i32
    %c0_i32_1 = arith.constant 0 : i32
    return %arg0, %c0_i32, %c0_i32_0 : i32, i32, i32
  }
  func.func @transform_5(%arg0: i32) -> (i32, i32, i32) {
    %c0_i32 = arith.constant 0 : i32
    %c0_i32_0 = arith.constant 0 : i32
    %c0_i32_1 = arith.constant 0 : i32
    return %arg0, %c0_i32, %c0_i32_0 : i32, i32, i32
  }
}

</mosaic_0001>

<bundles_post_ra>
// kernel: coattnet_forward.1
= control target key start
LH: loop header
LB: loop body
LE: loop exit
PB: predicated region body
PF: predicated region fallthrough
CT: control target
= control target key end

     0   :  { %v2089_v0 = vmov 0.0   ;;  %vm2090_vm0 = vmmov 0   ;;  %vm130_vm1 = vcmask 392192   ;;  %v32_v33 = vlaneseq  ;;  %s2704_s0 = inlined_call_operand.vmem [shape: bf16[2,48,128], index: 0, kind: input, shape index: {}]   ;;  %s2705_s2 = inlined_call_operand.vmem [shape: bf16[48,48], index: 2, kind: input, shape index: {}]   ;;  %s2706_s1 = inlined_call_operand.vmem [shape: bf16[2,48,128], index: 1, kind: input, shape index: {}]   ;;  %s2707_s3 = inlined_call_operand.vmem [shape: f32[48,1], index: 3, kind: input, shape index: {}]   ;;  %s2708_s5 = inlined_call_operand.vmem [shape: bf16[2,48,128], index: 5, kind: output, shape index: {1}]   ;;  %s2709_s4 = inlined_call_operand.vmem [shape: bf16[2,48,128], index: 4, kind: output, shape index: {0}]  }
   0x1   :  { %1789 = vmatprep.subr.bf16.mxu0 %v2089_v0  ;;  %v2126_v1 = vld [vmem:[%s2704_s0] sm:$0xff]   ;;  %1795 = vmatprep.mubr.msk.bf16.mxu0 %vm2090_vm0, %v2089_v0  ;;  %v2134_v2 = vld [vmem:[%s2704_s0 + $0x8] sm:$0xff]   ;;  %v2140_v3 = vld [vmem:[%s2704_s0 + $0x10] sm:$0xff]  }
   0x2   :  { %1790 = vmatpush3.bf16.msra.mxu0 %v2126_v1  ;;  %v2147_v4 = vld [vmem:[%s2705_s2] sm:$0xff]   ;;  %v2158_v5 = vld [vmem:[%s2705_s2 + $0x8] sm:$0xff]   ;;  %v2167_v6 = vld [vmem:[%s2705_s2 + $0x10] sm:$0xff]   ;;  %v33_v34 = vand.u32 127, %v32_v33 }
   0x3   :  { %1791 = vmatprep.subr.bf16.mxu0 %v2089_v0  ;;  %v2176_v7 = vld [vmem:[%s2706_s1] sm:$0xff]   ;;  %v2181_v8 = vld [vmem:[%s2706_s1 + $0x8] sm:$0xff]   ;;  %v2190_v9 = vld [vmem:[%s2706_s1 + $0x10] sm:$0xff]  }
   0x4   :  { %1807 = vmatprep.subr.bf16.mxu1 %v2176_v7  ;;  %vm34_vm2 = vcmp.ge.s32.totalorder %v33_v34, 64 }
   0x5   :  { %1808 = vmatpush3.bf16.msra.mxu1 %v2176_v7  ;;  %v2207_v35 = vsel %vm34_vm2, -1e+30, %v2089_v0 }
   0x6   :  { %1792 = vmatpush3.bf16.msra.mxu0 %v2134_v2  ;;  %1809 = vmatprep.subr.bf16.mxu1 %v2181_v8 }
   0x7   :  { %1793 = vmatprep.subr.bf16.mxu0 %v2089_v0 }
   0x9   :  { %1810 = vmatpush3.bf16.msra.mxu1 %v2181_v8 }
   0xa   :  { %1794 = vmatpush3.bf16.msra.mxu0 %v2140_v3  ;;  %1811 = vmatprep.subr.bf16.mxu1 %v2190_v9 }
   0xb   :  { %1829 = vmatprep.subr.bf16.mxu0 %v2089_v0 }
   0xd   :  { %1796 = vmatmul.mubr.msk.bf16.vlgmr.msra.gmra.mrb[0].mxu0 %vm130_vm1, %v2147_v4  ;;  %1812 = vmatpush3.bf16.msra.mxu1 %v2190_v9 }
   0xe   :  { %1799 = vmatprep.mubr.msk.bf16.mxu0 %vm2090_vm0, %v2089_v0  ;;  %1857 = vmatprep.subr.bf16.mxu1 %v2089_v0 }
  0x15   :  { %1800 = vmatmul.mubr.msk.bf16.gmra.mrb[4].mxu0 %vm130_vm1, %v2158_v5 }
  0x16   :  { %1803 = vmatprep.mubr.msk.bf16.mxu0 %vm2090_vm0, %v2089_v0 }
  0x1d   :  { %1804 = vmatmul.mubr.msk.bf16.gmra.mrb[8].mxu0 %vm130_vm1, %v2167_v6 }
  0x1e   :  { %1845 = vmatprep.mubr.msk.bf16.mxu0 %vm2090_vm0, %v2089_v0 }
  0xe0   :  { %v174_v10 = vpop.f32.mrb[0].mxu0 }
  0xe1   :  { %v1797_v11 = vpop.f32.mrb[1].mxu0 }
  0xe2   :  { %v177_v12 = vpop.f32.mrb[2].mxu0 }
  0xe3   :  { %v1798_v13 = vpop.f32.mrb[3].mxu0  ;;  %v197_v14 = vpack.c.bf16 %v177_v12, %v174_v10 }
  0xe5   :  { %200 = vxpose.xlu0.c.b16.start [1/3] (short) %v197_v14, 128 }
  0xe8   :  { %v182_v15 = vpop.f32.mrb[4].mxu0 }
  0xe9   :  { %v1801_v16 = vpop.f32.mrb[5].mxu0 }
  0xea   :  { %v185_v17 = vpop.f32.mrb[6].mxu0 }
  0xeb   :  { %v198_v18 = vpack.c.bf16 %v185_v17, %v182_v15  ;;  %v1802_v19 = vpop.f32.mrb[7].mxu0 }
  0xed   :  { %201 = vxpose.xlu0.c.b16.cont [2/3] (short) %v198_v18, 128 }
  0xf0   :  { %v190_v20 = vpop.f32.mrb[8].mxu0 }
  0xf1   :  { %v1805_v21 = vpop.f32.mrb[9].mxu0 }
  0xf2   :  { %v193_v22 = vpop.f32.mrb[10].mxu0 }
  0xf3   :  { %v199_v23 = vpack.c.bf16 %v193_v22, %v190_v20  ;;  %v1806_v24 = vpop.f32.mrb[11].mxu0 }
  0xf5   :  { %202 = vxpose.xlu0.c.b16.end [3/3] (short) %v199_v23, 128 }
 0x153   :  { %v208_v25 = vpop.trf.xlu0 }
 0x154   :  { %1813 = vmatprep.mubr.msk.bf16.mxu1 %vm130_vm1, %v208_v25 }
 0x157   :  { %v209_v26 = vpop.trf.xlu0 }
 0x158   :  { %1814 = vmatmul.mubr.msk.bf16.vlgmr.msra.gmra.mrb[0].mxu1 %vm130_vm1, %v209_v26 }
 0x15b   :  { %v210_v27 = vpop.trf.xlu0 }
 0x15c   :  { %1817 = vmatprep.mubr.msk.bf16.mxu1 %vm130_vm1, %v210_v27 }
 0x15f   :  { %v211_v28 = vpop.trf.xlu0 }
 0x160   :  { %1818 = vmatmul.mubr.msk.bf16.gmra.mrb[4].mxu1 %vm130_vm1, %v211_v28 }
 0x163   :  { %v212_v29 = vpop.trf.xlu0 }
 0x164   :  { %1821 = vmatprep.mubr.msk.bf16.mxu1 %vm130_vm1, %v212_v29 }
 0x167   :  { %v213_v30 = vpop.trf.xlu0 }
 0x168   :  { %1822 = vmatmul.mubr.msk.bf16.gmra.mrb[8].mxu1 %vm130_vm1, %v213_v30 }
 0x16b   :  { %v214_v31 = vpop.trf.xlu0 }
 0x16c   :  { %1825 = vmatprep.mubr.msk.bf16.mxu1 %vm130_vm1, %v214_v31 }
 0x16f   :  { %v215_v32 = vpop.trf.xlu0 }
 0x170   :  { %1826 = vmatmul.mubr.msk.bf16.gmra.mrb[12].mxu1 %vm130_vm1, %v215_v32 }
 0x171   :  { %1873 = vmatprep.mubr.msk.bf16.mxu1 %vm2090_vm0, %v2089_v0 }
 0x22b   :  { %v1815_v36 = vpop.f32.mrb[0].mxu1 }
 0x22c   :  { %v292_v37 = vpop.f32.mrb[1].mxu1  ;;  %v2214_v41 = vadd.f32 %v1815_v36, %v2207_v35 }
 0x22d   :  { %v2210_v38 = vadd.f32 %v292_v37, %v2207_v35  ;;  %v1816_v39 = vpop.f32.mrb[2].mxu1 }
 0x22e   :  { %v295_v40 = vpop.f32.mrb[3].mxu1  ;;  %v2241_v61 = vadd.f32 %v1816_v39, %v2207_v35 }
 0x22f   :  { %387 = vmax.xlane.f32.xlu0 %v2210_v38  ;;  %v2247_v11 = vadd.f32 %v295_v40, %v2207_v35 }
 0x233   :  { %391 = vmax.xlane.f32.xlu0 %v2214_v41  ;;  %v1819_v42 = vpop.f32.mrb[4].mxu1 }
 0x234   :  { %v308_v43 = vpop.f32.mrb[5].mxu1  ;;  %v2222_v47 = vadd.f32 %v1819_v42, %v2207_v35 }
 0x235   :  { %v2218_v44 = vadd.f32 %v308_v43, %v2207_v35  ;;  %v1820_v45 = vpop.f32.mrb[6].mxu1 }
 0x236   :  { %v311_v46 = vpop.f32.mrb[7].mxu1  ;;  %v2233_v57 = vadd.f32 %v1820_v45, %v2207_v35  ;;  %v638_v15 = vmax.f32 %v2214_v41, %v2222_v47 }
 0x237   :  { %395 = vmax.xlane.f32.xlu0 %v2218_v44  ;;  %v2236_v58 = vadd.f32 %v311_v46, %v2207_v35  ;;  %v636_v20 = vmax.f32 %v2210_v38, %v2218_v44 }
 0x238   :  { %v639_v16 = vmax.f32 %v2241_v61, %v2233_v57 }
 0x239   :  { %v637_v21 = vmax.f32 %v2247_v11, %v2236_v58 }
 0x23b   :  { %399 = vmax.xlane.f32.xlu0 %v2222_v47  ;;  %v1823_v48 = vpop.f32.mrb[8].mxu1 }
 0x23c   :  { %v324_v49 = vpop.f32.mrb[9].mxu1  ;;  %v333_v53 = vadd.f32 %v1823_v48, %v2207_v35 }
 0x23d   :  { %v325_v50 = vadd.f32 %v324_v49, %v2207_v35  ;;  %v1824_v51 = vpop.f32.mrb[10].mxu1 }
 0x23e   :  { %v327_v52 = vpop.f32.mrb[11].mxu1  ;;  %v336_v55 = vadd.f32 %v1824_v51, %v2207_v35  ;;  %v2238_v59 = vadd.f32 -1e+30, %v333_v53 }
 0x23f   :  { %v2227_v54 = vadd.f32 -1e+30, %v325_v50  ;;  %v328_v56 = vadd.f32 %v327_v52, %v2207_v35 }
 0x240   :  { %v2243_v62 = vadd.f32 -1e+30, %v336_v55  ;;  %v642_v24 = vmax.f32 %v638_v15, %v2238_v59 }
 0x241   :  { %403 = vmax.xlane.f32.xlu0 %v2227_v54  ;;  %v2249_v12 = vadd.f32 -1e+30, %v328_v56  ;;  %v640_v27 = vmax.f32 %v636_v20, %v2227_v54 }
 0x242   :  { %v643_v25 = vmax.f32 %v639_v16, %v2243_v62 }
 0x243   :  { %v1827_v60 = vpop.f32.mrb[12].mxu1  ;;  %v641_v28 = vmax.f32 %v637_v21, %v2249_v12 }
 0x244   :  { %v349_v63 = vadd.f32 %v1827_v60, %v2207_v35  ;;  %v340_v10 = vpop.f32.mrb[13].mxu1 }
 0x245   :  { %v341_v13 = vadd.f32 %v340_v10, %v2207_v35  ;;  %407 = vmax.xlane.f32.xlu0 %v2238_v59  ;;  %v1828_v14 = vpop.f32.mrb[14].mxu1 }
 0x246   :  { %v2257_v17 = vadd.f32 -1e+30, %v349_v63  ;;  %v352_v18 = vadd.f32 %v1828_v14, %v2207_v35  ;;  %v343_v19 = vpop.f32.mrb[15].mxu1 }
 0x247   :  { %v2264_v22 = vadd.f32 -1e+30, %v341_v13  ;;  %v344_v23 = vadd.f32 %v343_v19, %v2207_v35 }
 0x248   :  { %v2269_v26 = vadd.f32 -1e+30, %v352_v18  ;;  %v646_v30 = vmax.f32 %v642_v24, %v2257_v17 }
 0x249   :  { %v2273_v29 = vadd.f32 -1e+30, %v344_v23  ;;  %411 = vmax.xlane.f32.xlu0 %v2264_v22  ;;  %v644_v32 = vmax.f32 %v640_v27, %v2264_v22 }
 0x24a   :  { %v647_v31 = vmax.f32 %v643_v25, %v2269_v26 }
 0x24b   :  { %v645_v34 = vmax.f32 %v641_v28, %v2273_v29 }
 0x24c   :  { %v649_v36 = vmax.f32 %v646_v30, %v647_v31 }
 0x24d   :  { %v648_v37 = vmax.f32 %v644_v32, %v645_v34  ;;  %415 = vmax.xlane.f32.xlu0 %v2257_v17 }
 0x24f   :  { %v650_v39 = vmax.f32 %v648_v37, %v649_v36 }
 0x251   :  { %v651_v40 = vrot.slane %v650_v39, 4 }
 0x253   :  { %v652_v42 = vmax.f32 %v650_v39, %v651_v40 }
 0x255   :  { %v653_v43 = vrot.slane %v652_v42, 2 }
 0x257   :  { %v654_v45 = vmax.f32 %v652_v42, %v653_v43 }
 0x259   :  { %v655_v46 = vrot.slane %v654_v45, 1 }
 0x25b   :  { %v656_v48 = vmax.f32 %v654_v45, %v655_v46 }
 0x25d   :  { %v657_v49 = vsub.f32 %v2210_v38, %v656_v48  ;;  %v658_v50 = vsub.f32 %v2247_v11, %v656_v48  ;;  %v659_v51 = vsub.f32 %v2214_v41, %v656_v48  ;;  %v660_v52 = vsub.f32 %v2241_v61, %v656_v48 }
 0x25e   :  { %v661_v56 = vsub.f32 %v2218_v44, %v656_v48  ;;  %v662_v60 = vsub.f32 %v2236_v58, %v656_v48  ;;  %v663_v10 = vsub.f32 %v2222_v47, %v656_v48  ;;  %v664_v15 = vsub.f32 %v2233_v57, %v656_v48 }
 0x25f   :  { %v673_v53 = vpack.c.bf16 %v658_v50, %v657_v49  ;;  %v674_v55 = vpack.c.bf16 %v660_v52, %v659_v51  ;;  %v665_v16 = vsub.f32 %v2227_v54, %v656_v48  ;;  %v666_v20 = vsub.f32 %v2249_v12, %v656_v48 }
 0x260   :  { %v675_v14 = vpack.c.bf16 %v662_v60, %v661_v56  ;;  %v676_v19 = vpack.c.bf16 %v664_v15, %v663_v10  ;;  %v667_v21 = vsub.f32 %v2238_v59, %v656_v48  ;;  %v668_v25 = vsub.f32 %v2243_v62, %v656_v48  ;;  %v2324_v56 = vld [vmem:[%s2704_s0 + $0x28] sm:$0xff]  }
 0x261   :  { %v682_v63 = vmul.bf16 1069105081, %v673_v53  ;;  %v685_v13 = vmul.bf16 1069105081, %v674_v55  ;;  %v677_v24 = vpack.c.bf16 %v666_v20, %v665_v16  ;;  %v669_v28 = vsub.f32 %v2264_v22, %v656_v48  ;;  %v2307_v53 = vld [vmem:[%s2704_s0 + $0x18] sm:$0xff]   ;;  %v2317_v55 = vld [vmem:[%s2704_s0 + $0x20] sm:$0xff]  }
 0x262   :  { %v688_v18 = vmul.bf16 1069105081, %v675_v14  ;;  %v691_v23 = vmul.bf16 1069105081, %v676_v19  ;;  %v670_v30 = vsub.f32 %v2273_v29, %v656_v48  ;;  %v678_v32 = vpack.c.bf16 %v668_v25, %v667_v21 }
 0x263   :  { %2001 = vpow.bf16 %v682_v63  ;;  %v694_v31 = vmul.bf16 1069105081, %v677_v24  ;;  %v671_v39 = vsub.f32 %v2257_v17, %v656_v48  ;;  %v672_v40 = vsub.f32 %v2269_v26, %v656_v48 }
 0x264   :  { %2003 = vpow.bf16 %v685_v13  ;;  %v679_v36 = vpack.c.bf16 %v670_v30, %v669_v28  ;;  %v697_v37 = vmul.bf16 1069105081, %v678_v32 }
 0x265   :  { %2005 = vpow.bf16 %v688_v18  ;;  %v680_v45 = vpack.c.bf16 %v672_v40, %v671_v39 }
 0x266   :  { %2007 = vpow.bf16 %v691_v23  ;;  %v700_v43 = vmul.bf16 1069105081, %v679_v36 }
 0x267   :  { %2009 = vpow.bf16 %v694_v31  ;;  %v703_v49 = vmul.bf16 1069105081, %v680_v45 }
 0x268   :  { %2011 = vpow.bf16 %v697_v37 }
 0x269   :  { %2013 = vpow.bf16 %v700_v43 }
 0x26a   :  { %2015 = vpow.bf16 %v703_v49 }
 0x26e   :  { %v2002_v27 = vpop.eup %2001 }
 0x26f   :  { %1858 = vmatpush3.bf16.msra.mxu1 %v2002_v27  ;;  %v2004_v34 = vpop.eup %2003 }
 0x270   :  { %1859 = vmatprep.subr.bf16.mxu1 %v2089_v0  ;;  %v2006_v42 = vpop.eup %2005 }
 0x271   :  { %v2008_v46 = vpop.eup %2007 }
 0x272   :  { %v2010_v50 = vpop.eup %2009 }
 0x273   :  { %1860 = vmatpush3.bf16.msra.mxu1 %v2004_v34  ;;  %v2012_v48 = vpop.eup %2011 }
 0x274   :  { %1861 = vmatprep.subr.bf16.mxu1 %v2089_v0  ;;  %v2014_v51 = vpop.eup %2013 }
 0x275   :  { %v2016_v52 = vpop.eup %2015 }
 0x277   :  { %1862 = vmatpush3.bf16.msra.mxu1 %v2006_v42 }
 0x278   :  { %1863 = vmatprep.subr.bf16.mxu1 %v2089_v0 }
 0x27b   :  { %1864 = vmatpush3.bf16.msra.mxu1 %v2008_v46 }
 0x27c   :  { %1865 = vmatprep.subr.bf16.mxu1 %v2089_v0 }
 0x27f   :  { %1866 = vmatpush3.bf16.msra.mxu1 %v2010_v50 }
 0x280   :  { %1867 = vmatprep.subr.bf16.mxu1 %v2089_v0 }
 0x283   :  { %1868 = vmatpush3.bf16.msra.mxu1 %v2012_v48 }
 0x284   :  { %1869 = vmatprep.subr.bf16.mxu1 %v2089_v0 }
 0x287   :  { %1870 = vmatpush3.bf16.msra.mxu1 %v2014_v51 }
 0x288   :  { %1871 = vmatprep.subr.bf16.mxu1 %v2089_v0 }
 0x28b   :  { %1872 = vmatpush3.bf16.msra.mxu1 %v2016_v52 }
 0x28c   :  { %1885 = vmatprep.subr.bf16.mxu1 %v2089_v0 }
 0x28e   :  { %1874 = vmatmul.mubr.bf16.vlgmr.msra.gmra.mrb[16].mxu1 %v2176_v7  ;;  %v2347_v7 = vld [vmem:[%s2706_s1 + $0x18] sm:$0xff]  }
 0x28f   :  { %1886 = vmatpush3.bf16.msra.mxu1 %v2307_v53  ;;  %1877 = vmatprep.mubr.msk.bf16.mxu1 %vm2090_vm0, %v2089_v0 }
 0x290   :  { %1887 = vmatprep.subr.bf16.mxu1 %v2089_v0 }
 0x293   :  { %1888 = vmatpush3.bf16.msra.mxu1 %v2317_v55 }
 0x294   :  { %1889 = vmatprep.subr.bf16.mxu1 %v2089_v0 }
 0x296   :  { %1878 = vmatmul.mubr.bf16.gmra.mrb[20].mxu1 %v2181_v8 }
 0x297   :  { %1881 = vmatprep.mubr.msk.bf16.mxu1 %vm2090_vm0, %v2089_v0  ;;  %1890 = vmatpush3.bf16.msra.mxu1 %v2324_v56 }
 0x298   :  { %1903 = vmatprep.subr.bf16.mxu1 %v2347_v7 }
 0x29e   :  { %1882 = vmatmul.mubr.bf16.gmra.mrb[24].mxu1 %v2190_v9 }
 0x29f   :  { %1891 = vmatprep.mubr.msk.bf16.mxu1 %vm2090_vm0, %v2089_v0 }
 0x2a6   :  { %1892 = vmatmul.mubr.msk.bf16.vlgmr.msra.gmra.mrb[28].mxu1 %vm130_vm1, %v2147_v4  ;;  %v2352_v4 = vld [vmem:[%s2706_s1 + $0x20] sm:$0xff]  }
 0x2a7   :  { %1895 = vmatprep.mubr.msk.bf16.mxu1 %vm2090_vm0, %v2089_v0  ;;  %1904 = vmatpush3.bf16.msra.mxu1 %v2347_v7 }
 0x2a8   :  { %1905 = vmatprep.subr.bf16.mxu1 %v2352_v4 }
 0x2ab   :  { %1906 = vmatpush3.bf16.msra.mxu1 %v2352_v4 }
 0x2ae   :  { %1896 = vmatmul.mubr.msk.bf16.gmra.mrb[32].mxu1 %vm130_vm1, %v2158_v5  ;;  %v2360_v5 = vld [vmem:[%s2706_s1 + $0x28] sm:$0xff]  }
 0x2af   :  { %1899 = vmatprep.mubr.msk.bf16.mxu1 %vm2090_vm0, %v2089_v0  ;;  %1907 = vmatprep.subr.bf16.mxu1 %v2360_v5 }
 0x2b0   :  { %1908 = vmatpush3.bf16.msra.mxu1 %v2360_v5 }
 0x2b1   :  { %1953 = vmatprep.subr.bf16.mxu1 %v2089_v0 }
 0x2b6   :  { %1900 = vmatmul.mubr.msk.bf16.gmra.mrb[36].mxu1 %vm130_vm1, %v2167_v6 }
 0x2bc   :  { %v388_v52 = vpop.xlane.xlu0 %387 }
 0x361   :  { %v2366_v6 = vpop.f32.mrb[16].mxu1 }
 0x362   :  { %v1875_v8 = vpop.f32.mrb[17].mxu1 }
 0x363   :  { %v2368_v9 = vpop.f32.mrb[18].mxu1 }
 0x364   :  { %v1876_v60 = vpop.f32.mrb[19].mxu1 }
 0x365   :  { %v419_v60 = vsub.f32 %v2210_v38, %v388_v52 }
 0x369   :  { %v2370_v63 = vpop.f32.mrb[20].mxu1 }
 0x36a   :  { %v1879_v10 = vpop.f32.mrb[21].mxu1 }
 0x36b   :  { %v2372_v13 = vpop.f32.mrb[22].mxu1 }
 0x36c   :  { %v1880_v14 = vpop.f32.mrb[23].mxu1 }
 0x36d   :  { %v392_v14 = vpop.xlane.xlu0 %391 }
 0x371   :  { %v2374_v15 = vpop.f32.mrb[24].mxu1 }
 0x372   :  { %v1883_v16 = vpop.f32.mrb[25].mxu1 }
 0x373   :  { %v2376_v18 = vpop.f32.mrb[26].mxu1 }
 0x374   :  { %v1884_v19 = vpop.f32.mrb[27].mxu1 }
 0x379   :  { %v894_v20 = vpop.f32.mrb[28].mxu1 }
 0x37a   :  { %v1893_v21 = vpop.f32.mrb[29].mxu1 }
 0x37b   :  { %v897_v23 = vpop.f32.mrb[30].mxu1 }
 0x37c   :  { %v1894_v24 = vpop.f32.mrb[31].mxu1  ;;  %v917_v25 = vpack.c.bf16 %v897_v23, %v894_v20  ;;  %v421_v20 = vsub.f32 %v2214_v41, %v392_v14 }
 0x37e   :  { %920 = vxpose.xlu1.c.b16.start [1/3] (short) %v917_v25, 128 }
 0x381   :  { %v902_v27 = vpop.f32.mrb[32].mxu1 }
 0x382   :  { %v1897_v28 = vpop.f32.mrb[33].mxu1 }
 0x383   :  { %v905_v30 = vpop.f32.mrb[34].mxu1 }
 0x384   :  { %v918_v31 = vpack.c.bf16 %v905_v30, %v902_v27  ;;  %v1898_v32 = vpop.f32.mrb[35].mxu1  ;;  %v396_v27 = vpop.xlane.xlu0 %395 }
 0x386   :  { %921 = vxpose.xlu1.c.b16.cont [2/3] (short) %v918_v31, 128  ;;  %v423_v31 = vsub.f32 %v2218_v44, %v396_v27 }
 0x389   :  { %v910_v34 = vpop.f32.mrb[36].mxu1 }
 0x38a   :  { %v1901_v36 = vpop.f32.mrb[37].mxu1 }
 0x38b   :  { %v913_v37 = vpop.f32.mrb[38].mxu1 }
 0x38c   :  { %v919_v39 = vpack.c.bf16 %v913_v37, %v910_v34  ;;  %v1902_v40 = vpop.f32.mrb[39].mxu1  ;;  %v400_v34 = vpop.xlane.xlu0 %399 }
 0x38e   :  { %922 = vxpose.xlu1.c.b16.end [3/3] (short) %v919_v39, 128 }
 0x3af   :  { %389 = vmax.xlane.f32.xlu1 %v2247_v11 }
 0x3b3   :  { %393 = vmax.xlane.f32.xlu1 %v2241_v61 }
 0x3b7   :  { %397 = vmax.xlane.f32.xlu1 %v2236_v58 }
 0x3bb   :  { %401 = vmax.xlane.f32.xlu1 %v2233_v57 }
 0x3bf   :  { %405 = vmax.xlane.f32.xlu1 %v2249_v12 }
 0x3c3   :  { %409 = vmax.xlane.f32.xlu1 %v2243_v62 }
 0x3c7   :  { %413 = vmax.xlane.f32.xlu1 %v2273_v29 }
 0x3cb   :  { %417 = vmax.xlane.f32.xlu1 %v2269_v26 }
 0x3ec   :  { %v928_v42 = vpop.trf.xlu1 }
 0x3ed   :  { %1909 = vmatprep.mubr.msk.bf16.mxu1 %vm130_vm1, %v928_v42 }
 0x3f0   :  { %v929_v43 = vpop.trf.xlu1 }
 0x3f1   :  { %1910 = vmatmul.mubr.msk.bf16.vlgmr.msra.gmra.mrb[40].mxu1 %vm130_vm1, %v929_v43 }
 0x3f4   :  { %v930_v45 = vpop.trf.xlu1 }
 0x3f5   :  { %1913 = vmatprep.mubr.msk.bf16.mxu1 %vm130_vm1, %v930_v45 }
 0x3f8   :  { %v931_v46 = vpop.trf.xlu1 }
 0x3f9   :  { %1914 = vmatmul.mubr.msk.bf16.gmra.mrb[44].mxu1 %vm130_vm1, %v931_v46 }
 0x3fc   :  { %v932_v49 = vpop.trf.xlu1 }
 0x3fd   :  { %1917 = vmatprep.mubr.msk.bf16.mxu1 %vm130_vm1, %v932_v49 }
 0x400   :  { %v933_v50 = vpop.trf.xlu1 }
 0x401   :  { %1918 = vmatmul.mubr.msk.bf16.gmra.mrb[48].mxu1 %vm130_vm1, %v933_v50 }
 0x404   :  { %v934_v48 = vpop.trf.xlu1 }
 0x405   :  { %1921 = vmatprep.mubr.msk.bf16.mxu1 %vm130_vm1, %v934_v48 }
 0x408   :  { %v935_v51 = vpop.trf.xlu1 }
 0x409   :  { %1922 = vmatmul.mubr.msk.bf16.gmra.mrb[52].mxu1 %vm130_vm1, %v935_v51 }
 0x40a   :  { %1969 = vmatprep.mubr.msk.bf16.mxu1 %vm2090_vm0, %v2089_v0 }
 0x43c   :  { %v390_v8 = vpop.xlane.xlu1 %389 }
 0x43d   :  { %v420_v10 = vsub.f32 %v2247_v11, %v390_v8 }
 0x43f   :  { %v435_v16 = vpack.c.bf16 %v420_v10, %v419_v60 }
 0x440   :  { %v394_v19 = vpop.xlane.xlu1 %393 }
 0x441   :  { %v444_v21 = vmul.bf16 1069105081, %v435_v16  ;;  %v422_v23 = vsub.f32 %v2241_v61, %v394_v19  ;;  %v425_v61 = vsub.f32 %v2222_v47, %v400_v34 }
 0x443   :  { %2017 = vpow.bf16 %v444_v21  ;;  %v436_v24 = vpack.c.bf16 %v422_v23, %v421_v20 }
 0x444   :  { %v398_v25 = vpop.xlane.xlu1 %397 }
 0x445   :  { %v447_v28 = vmul.bf16 1069105081, %v436_v24  ;;  %v424_v30 = vsub.f32 %v2236_v58, %v398_v25  ;;  %v404_v58 = vpop.xlane.xlu0 %403 }
 0x446   :  { %v427_v43 = vsub.f32 %v2227_v54, %v404_v58 }
 0x447   :  { %2019 = vpow.bf16 %v447_v28  ;;  %v437_v38 = vpack.c.bf16 %v424_v30, %v423_v31 }
 0x448   :  { %v402_v11 = vpop.xlane.xlu1 %401 }
 0x449   :  { %v450_v36 = vmul.bf16 1069105081, %v437_v38  ;;  %v426_v41 = vsub.f32 %v2233_v57, %v402_v11  ;;  %v408_v49 = vpop.xlane.xlu0 %407 }
 0x44a   :  { %v429_v48 = vsub.f32 %v2238_v59, %v408_v49 }
 0x44b   :  { %2021 = vpow.bf16 %v450_v36  ;;  %v438_v37 = vpack.c.bf16 %v426_v41, %v425_v61 }
 0x44c   :  { %v406_v39 = vpop.xlane.xlu1 %405 }
 0x44d   :  { %v453_v42 = vmul.bf16 1069105081, %v438_v37  ;;  %v428_v44 = vsub.f32 %v2249_v12, %v406_v39  ;;  %v412_v8 = vpop.xlane.xlu0 %411 }
 0x44e   :  { %v2018_v32 = vpop.eup %2017  ;;  %v431_v10 = vsub.f32 %v2264_v22, %v412_v8  ;;  %v2091_v22 = vmov 0  }
 0x44f   :  { %1830 = vmatpush3.bf16.xpose.msra.mxu0 %v2018_v32  ;;  %2023 = vpow.bf16 %v453_v42  ;;  %v439_v57 = vpack.c.bf16 %v428_v44, %v427_v43  ;;  %1985 = vset.pattern.permute.xlu1 %v2091_v22 }
 0x450   :  { %1831 = vmatprep.subr.bf16.mxu0 %v2089_v0  ;;  %v410_v45 = vpop.xlane.xlu1 %409  ;;  %1984 = vset.pattern.permute.xlu0 %v2091_v22 }
 0x451   :  { %v456_v50 = vmul.bf16 1069105081, %v439_v57  ;;  %v430_v47 = vsub.f32 %v2243_v62, %v410_v45  ;;  %v416_v19 = vpop.xlane.xlu0 %415 }
 0x452   :  { %v2020_v40 = vpop.eup %2019  ;;  %v433_v21 = vsub.f32 %v2257_v17, %v416_v19 }
 0x453   :  { %2025 = vpow.bf16 %v456_v50  ;;  %v440_v12 = vpack.c.bf16 %v430_v47, %v429_v48 }
 0x454   :  { %v414_v51 = vpop.xlane.xlu1 %413 }
 0x455   :  { %v459_v60 = vmul.bf16 1069105081, %v440_v12  ;;  %v432_v54 = vsub.f32 %v2273_v29, %v414_v51 }
 0x456   :  { %v2022_v46 = vpop.eup %2021 }
 0x457   :  { %1832 = vmatpush3.bf16.xpose.msra.mxu0 %v2020_v40  ;;  %2027 = vpow.bf16 %v459_v60  ;;  %v441_v62 = vpack.c.bf16 %v432_v54, %v431_v10 }
 0x458   :  { %1833 = vmatprep.subr.bf16.mxu0 %v2089_v0  ;;  %v418_v14 = vpop.xlane.xlu1 %417 }
 0x459   :  { %v462_v20 = vmul.bf16 1069105081, %v441_v62  ;;  %v434_v59 = vsub.f32 %v2269_v26, %v418_v14 }
 0x45a   :  { %v2024_v52 = vpop.eup %2023 }
 0x45b   :  { %2029 = vpow.bf16 %v462_v20  ;;  %v442_v29 = vpack.c.bf16 %v434_v59, %v433_v21 }
 0x45d   :  { %v465_v24 = vmul.bf16 1069105081, %v442_v29 }
 0x45e   :  { %v2026_v16 = vpop.eup %2025 }
 0x45f   :  { %1834 = vmatpush3.bf16.xpose.msra.mxu0 %v2022_v46  ;;  %2031 = vpow.bf16 %v465_v24 }
 0x460   :  { %1835 = vmatprep.subr.bf16.mxu0 %v2089_v0 }
 0x462   :  { %v2028_v23 = vpop.eup %2027 }
 0x466   :  { %v2030_v25 = vpop.eup %2029 }
 0x467   :  { %1836 = vmatpush3.bf16.xpose.msra.mxu0 %v2024_v52 }
 0x468   :  { %1837 = vmatprep.subr.bf16.mxu0 %v2089_v0 }
 0x46a   :  { %v2032_v26 = vpop.eup %2031 }
 0x46f   :  { %1838 = vmatpush3.bf16.xpose.msra.mxu0 %v2026_v16 }
 0x470   :  { %1839 = vmatprep.subr.bf16.mxu0 %v2089_v0 }
 0x477   :  { %1840 = vmatpush3.bf16.xpose.msra.mxu0 %v2028_v23 }
 0x478   :  { %1841 = vmatprep.subr.bf16.mxu0 %v2089_v0 }
 0x47f   :  { %1842 = vmatpush3.bf16.xpose.msra.mxu0 %v2030_v25 }
 0x480   :  { %1843 = vmatprep.subr.bf16.mxu0 %v2089_v0 }
 0x487   :  { %1844 = vmatpush3.bf16.xpose.msra.mxu0 %v2032_v26 }
 0x488   :  { %1925 = vmatprep.subr.bf16.mxu0 %v2089_v0 }
 0x48e   :  { %1846 = vmatmul.mubr.bf16.vlgmr.msra.gmra.mrb[12].mxu0 %v2126_v1 }
 0x48f   :  { %1849 = vmatprep.mubr.msk.bf16.mxu0 %vm2090_vm0, %v2089_v0 }
 0x496   :  { %1850 = vmatmul.mubr.bf16.gmra.mrb[16].mxu0 %v2134_v2 }
 0x497   :  { %1853 = vmatprep.mubr.msk.bf16.mxu0 %vm2090_vm0, %v2089_v0 }
 0x49e   :  { %1854 = vmatmul.mubr.bf16.gmra.mrb[20].mxu0 %v2140_v3 }
 0x49f   :  { %1941 = vmatprep.mubr.msk.bf16.mxu0 %vm2090_vm0, %v2089_v0 }
 0x4c4   :  { %v1911_v17 = vpop.f32.mrb[40].mxu1 }
 0x4c5   :  { %v1012_v27 = vpop.f32.mrb[41].mxu1  ;;  %v2437_v2 = vadd.f32 %v1911_v17, %v2207_v35 }
 0x4c6   :  { %v2430_v28 = vadd.f32 %v1012_v27, %v2207_v35  ;;  %v1912_v30 = vpop.f32.mrb[42].mxu1 }
 0x4c7   :  { %v1015_v1 = vpop.f32.mrb[43].mxu1  ;;  %v2441_v3 = vadd.f32 %v1912_v30, %v2207_v35 }
 0x4c8   :  { %v2433_v31 = vadd.f32 %v1015_v1, %v2207_v35  ;;  %1107 = vmax.xlane.f32.xlu0 %v2430_v28 }
 0x4ca   :  { %1109 = vmax.xlane.f32.xlu1 %v2433_v31 }
 0x4cc   :  { %v1915_v38 = vpop.f32.mrb[44].mxu1  ;;  %1111 = vmax.xlane.f32.xlu0 %v2437_v2 }
 0x4cd   :  { %v1028_v11 = vpop.f32.mrb[45].mxu1  ;;  %v2453_v61 = vadd.f32 %v1915_v38, %v2207_v35 }
 0x4ce   :  { %v2445_v32 = vadd.f32 %v1028_v11, %v2207_v35  ;;  %v1916_v34 = vpop.f32.mrb[46].mxu1  ;;  %1113 = vmax.xlane.f32.xlu1 %v2441_v3 }
 0x4cf   :  { %v1031_v36 = vpop.f32.mrb[47].mxu1  ;;  %v2457_v37 = vadd.f32 %v1916_v34, %v2207_v35  ;;  %v1329_v60 = vmax.f32 %v2437_v2, %v2453_v61 }
 0x4d0   :  { %v2449_v41 = vadd.f32 %v1031_v36, %v2207_v35  ;;  %1115 = vmax.xlane.f32.xlu0 %v2445_v32  ;;  %v1327_v16 = vmax.f32 %v2430_v28, %v2445_v32 }
 0x4d1   :  { %v1330_v54 = vmax.f32 %v2441_v3, %v2457_v37 }
 0x4d2   :  { %1117 = vmax.xlane.f32.xlu1 %v2449_v41  ;;  %v1328_v19 = vmax.f32 %v2433_v31, %v2449_v41 }
 0x4d4   :  { %v1919_v39 = vpop.f32.mrb[48].mxu1  ;;  %1119 = vmax.xlane.f32.xlu0 %v2453_v61 }
 0x4d5   :  { %v1044_v40 = vpop.f32.mrb[49].mxu1  ;;  %v1053_v43 = vadd.f32 %v1919_v39, %v2207_v35 }
 0x4d6   :  { %v1045_v58 = vadd.f32 %v1044_v40, %v2207_v35  ;;  %v1920_v42 = vpop.f32.mrb[50].mxu1  ;;  %1121 = vmax.xlane.f32.xlu1 %v2457_v37 }
 0x4d7   :  { %v1047_v44 = vpop.f32.mrb[51].mxu1  ;;  %v1056_v46 = vadd.f32 %v1920_v42, %v2207_v35  ;;  %v2470_v50 = vadd.f32 -1e+30, %v1053_v43  ;;  %v27_v42 = vld [vmem:[%s2707_s3 + $0x8] sm:$0xff] }
 0x4d8   :  { %v2463_v57 = vadd.f32 -1e+30, %v1045_v58  ;;  %v1048_v45 = vadd.f32 %v1047_v44, %v2207_v35 }
 0x4d9   :  { %v2473_v48 = vadd.f32 -1e+30, %v1056_v46  ;;  %v1333_v21 = vmax.f32 %v1329_v60, %v2470_v50  ;;  %v28_v60 = vld [vmem:[%s2707_s3 + $0x10] sm:$0xff] }
 0x4da   :  { %v2467_v49 = vadd.f32 -1e+30, %v1048_v45  ;;  %1123 = vmax.xlane.f32.xlu0 %v2463_v57  ;;  %v1331_v24 = vmax.f32 %v1327_v16, %v2463_v57 }
 0x4db   :  { %v1334_v29 = vmax.f32 %v1330_v54, %v2473_v48 }
 0x4dc   :  { %v1923_v47 = vpop.f32.mrb[52].mxu1  ;;  %1125 = vmax.xlane.f32.xlu1 %v2467_v49  ;;  %v1332_v22 = vmax.f32 %v1328_v19, %v2467_v49 }
 0x4dd   :  { %v1069_v12 = vadd.f32 %v1923_v47, %v2207_v35  ;;  %v1060_v51 = vpop.f32.mrb[53].mxu1 }
 0x4de   :  { %v1061_v52 = vadd.f32 %v1060_v51, %v2207_v35  ;;  %v1924_v8 = vpop.f32.mrb[54].mxu1  ;;  %1127 = vmax.xlane.f32.xlu0 %v2470_v50 }
 0x4df   :  { %v2482_v10 = vadd.f32 -1e+30, %v1069_v12  ;;  %v1072_v62 = vadd.f32 %v1924_v8, %v2207_v35  ;;  %v1063_v14 = vpop.f32.mrb[55].mxu1  ;;  %v26_v12 = vld [vmem:[%s2707_s3] sm:$0xff] }
 0x4e0   :  { %v2489_v20 = vadd.f32 -1e+30, %v1061_v52  ;;  %v1064_v59 = vadd.f32 %v1063_v14, %v2207_v35  ;;  %1129 = vmax.xlane.f32.xlu1 %v2473_v48 }
 0x4e1   :  { %v2495_v23 = vadd.f32 -1e+30, %v1072_v62  ;;  %v1337_v26 = vmax.f32 %v1333_v21, %v2482_v10 }
 0x4e2   :  { %v2499_v25 = vadd.f32 -1e+30, %v1064_v59  ;;  %1131 = vmax.xlane.f32.xlu0 %v2489_v20  ;;  %v1335_v17 = vmax.f32 %v1331_v24, %v2489_v20  ;;  %v29_v59 = vld [vmem:[%s2707_s3 + $0x18] sm:$0xff] }
 0x4e3   :  { %v1338_v35 = vmax.f32 %v1334_v29, %v2495_v23 }
 0x4e4   :  { %v1336_v27 = vmax.f32 %v1332_v22, %v2499_v25  ;;  %1133 = vmax.xlane.f32.xlu1 %v2499_v25 }
 0x4e5   :  { %v1340_v30 = vmax.f32 %v1337_v26, %v1338_v35  ;;  %v30_v26 = vld [vmem:[%s2707_s3 + $0x20] sm:$0xff] }
 0x4e6   :  { %v1339_v1 = vmax.f32 %v1335_v17, %v1336_v27  ;;  %1135 = vmax.xlane.f32.xlu0 %v2482_v10 }
 0x4e8   :  { %v1341_v38 = vmax.f32 %v1339_v1, %v1340_v30  ;;  %1137 = vmax.xlane.f32.xlu1 %v2495_v23  ;;  %v31_v1 = vld [vmem:[%s2707_s3 + $0x28] sm:$0xff] }
 0x4ea   :  { %v1342_v11 = vrot.slane %v1341_v38, 4 }
 0x4ec   :  { %v1343_v34 = vmax.f32 %v1341_v38, %v1342_v11 }
 0x4ee   :  { %v1344_v36 = vrot.slane %v1343_v34, 2 }
 0x4f0   :  { %v1345_v39 = vmax.f32 %v1343_v34, %v1344_v36 }
 0x4f2   :  { %v1346_v40 = vrot.slane %v1345_v39, 1 }
 0x4f4   :  { %v1347_v58 = vmax.f32 %v1345_v39, %v1346_v40 }
 0x4f6   :  { %v1348_v44 = vsub.f32 %v2430_v28, %v1347_v58  ;;  %v1349_v43 = vsub.f32 %v2433_v31, %v1347_v58  ;;  %v1350_v45 = vsub.f32 %v2437_v2, %v1347_v58  ;;  %v1351_v46 = vsub.f32 %v2441_v3, %v1347_v58 }
 0x4f7   :  { %v1352_v52 = vsub.f32 %v2445_v32, %v1347_v58  ;;  %v1353_v8 = vsub.f32 %v2449_v41, %v1347_v58  ;;  %v1354_v62 = vsub.f32 %v2453_v61, %v1347_v58  ;;  %v1355_v19 = vsub.f32 %v2457_v37, %v1347_v58 }
 0x4f8   :  { %v1364_v47 = vpack.c.bf16 %v1349_v43, %v1348_v44  ;;  %v1365_v51 = vpack.c.bf16 %v1351_v46, %v1350_v45  ;;  %v1356_v21 = vsub.f32 %v2463_v57, %v1347_v58  ;;  %v1357_v22 = vsub.f32 %v2467_v49, %v1347_v58 }
 0x4f9   :  { %532 = vperm.xlu1 %1985, %v27_v42   ;;  %v1366_v16 = vpack.c.bf16 %v1353_v8, %v1352_v52  ;;  %v1367_v24 = vpack.c.bf16 %v1355_v19, %v1354_v62  ;;  %v1358_v35 = vsub.f32 %v2470_v50, %v1347_v58  ;;  %v1359_v30 = vsub.f32 %v2473_v48, %v1347_v58 }
 0x4fa   :  { %v1373_v54 = vmul.bf16 1069105081, %v1364_v47  ;;  %v1376_v14 = vmul.bf16 1069105081, %v1365_v51  ;;  %v1368_v27 = vpack.c.bf16 %v1357_v22, %v1356_v21  ;;  %v1360_v11 = vsub.f32 %v2489_v20, %v1347_v58 }
 0x4fb   :  { %v1379_v29 = vmul.bf16 1069105081, %v1366_v16  ;;  %v1382_v17 = vmul.bf16 1069105081, %v1367_v24  ;;  %v1361_v34 = vsub.f32 %v2499_v25, %v1347_v58  ;;  %v1369_v39 = vpack.c.bf16 %v1359_v30, %v1358_v35 }
 0x4fc   :  { %527 = vperm.xlu0 %1984, %v26_v12   ;;  %2033 = vpow.bf16 %v1373_v54  ;;  %v1385_v36 = vmul.bf16 1069105081, %v1368_v27  ;;  %v1362_v43 = vsub.f32 %v2482_v10, %v1347_v58  ;;  %v1363_v45 = vsub.f32 %v2495_v23, %v1347_v58 }
 0x4fd   :  { %537 = vperm.xlu1 %1985, %v28_v60   ;;  %2035 = vpow.bf16 %v1376_v14  ;;  %v1370_v42 = vpack.c.bf16 %v1361_v34, %v1360_v11  ;;  %v1388_v44 = vmul.bf16 1069105081, %v1369_v39 }
 0x4fe   :  { %2037 = vpow.bf16 %v1379_v29  ;;  %v1371_v12 = vpack.c.bf16 %v1363_v45, %v1362_v43 }
 0x4ff   :  { %2039 = vpow.bf16 %v1382_v17  ;;  %v1391_v47 = vmul.bf16 1069105081, %v1370_v42 }
 0x500   :  { %2041 = vpow.bf16 %v1385_v36  ;;  %v1394_v52 = vmul.bf16 1069105081, %v1371_v12 }
 0x501   :  { %542 = vperm.xlu1 %1985, %v29_v59   ;;  %2043 = vpow.bf16 %v1388_v44 }
 0x502   :  { %2045 = vpow.bf16 %v1391_v47 }
 0x503   :  { %2047 = vpow.bf16 %v1394_v52 }
 0x505   :  { %547 = vperm.xlu1 %1985, %v30_v26  }
 0x507   :  { %v2034_v38 = vpop.eup %2033 }
 0x508   :  { %1954 = vmatpush3.bf16.msra.mxu1 %v2034_v38  ;;  %v2036_v40 = vpop.eup %2035 }
 0x509   :  { %552 = vperm.xlu1 %1985, %v31_v1   ;;  %1955 = vmatprep.subr.bf16.mxu1 %v2089_v0  ;;  %v2038_v46 = vpop.eup %2037 }
 0x50a   :  { %v2040_v51 = vpop.eup %2039 }
 0x50b   :  { %v2042_v8 = vpop.eup %2041 }
 0x50c   :  { %1956 = vmatpush3.bf16.msra.mxu1 %v2036_v40  ;;  %v2044_v58 = vpop.eup %2043 }
 0x50d   :  { %1957 = vmatprep.subr.bf16.mxu1 %v2089_v0  ;;  %v2046_v60 = vpop.eup %2045 }
 0x50e   :  { %v2048_v54 = vpop.eup %2047 }
 0x510   :  { %1958 = vmatpush3.bf16.msra.mxu1 %v2038_v46 }
 0x511   :  { %1959 = vmatprep.subr.bf16.mxu1 %v2089_v0 }
 0x514   :  { %1960 = vmatpush3.bf16.msra.mxu1 %v2040_v51 }
 0x515   :  { %1961 = vmatprep.subr.bf16.mxu1 %v2089_v0 }
 0x518   :  { %1962 = vmatpush3.bf16.msra.mxu1 %v2042_v8 }
 0x519   :  { %1963 = vmatprep.subr.bf16.mxu1 %v2089_v0 }
 0x51c   :  { %1964 = vmatpush3.bf16.msra.mxu1 %v2044_v58 }
 0x51d   :  { %1965 = vmatprep.subr.bf16.mxu1 %v2089_v0 }
 0x520   :  { %1966 = vmatpush3.bf16.msra.mxu1 %v2046_v60 }
 0x521   :  { %1967 = vmatprep.subr.bf16.mxu1 %v2089_v0 }
 0x524   :  { %1968 = vmatpush3.bf16.msra.mxu1 %v2048_v54 }
 0x527   :  { %1970 = vmatmul.mubr.bf16.vlgmr.msra.gmra.mrb[56].mxu1 %v2347_v7 }
 0x528   :  { %1973 = vmatprep.mubr.msk.bf16.mxu1 %vm2090_vm0, %v2089_v0 }
 0x52f   :  { %1974 = vmatmul.mubr.bf16.gmra.mrb[60].mxu1 %v2352_v4 }
 0x530   :  { %1977 = vmatprep.mubr.msk.bf16.mxu1 %vm2090_vm0, %v2089_v0 }
 0x537   :  { %1978 = vmatmul.mubr.bf16.gmra.mrb[64].mxu1 %v2360_v5 }
 0x555   :  { %v1108_v62 = vpop.xlane.xlu0 %1107 }
 0x556   :  { %v1139_v16 = vsub.f32 %v2430_v28, %v1108_v62 }
 0x557   :  { %v1110_v14 = vpop.xlane.xlu1 %1109 }
 0x558   :  { %v1140_v19 = vsub.f32 %v2433_v31, %v1110_v14 }
 0x559   :  { %v1112_v59 = vpop.xlane.xlu0 %1111 }
 0x55a   :  { %v1155_v21 = vpack.c.bf16 %v1140_v19, %v1139_v16  ;;  %v1141_v24 = vsub.f32 %v2437_v2, %v1112_v59 }
 0x55b   :  { %v1114_v29 = vpop.xlane.xlu1 %1113 }
 0x55c   :  { %v1164_v7 = vmul.bf16 1069105081, %v1155_v21  ;;  %v1142_v22 = vsub.f32 %v2441_v3, %v1114_v29 }
 0x55d   :  { %v1116_v4 = vpop.xlane.xlu0 %1115 }
 0x55e   :  { %2049 = vpow.bf16 %v1164_v7  ;;  %v1156_v26 = vpack.c.bf16 %v1142_v22, %v1141_v24  ;;  %v1143_v1 = vsub.f32 %v2445_v32, %v1116_v4 }
 0x55f   :  { %v1118_v35 = vpop.xlane.xlu1 %1117 }
 0x560   :  { %v1167_v5 = vmul.bf16 1069105081, %v1156_v26  ;;  %v1144_v27 = vsub.f32 %v2449_v41, %v1118_v35 }
 0x561   :  { %v2561_v17 = vpop.f32.mrb[12].mxu0  ;;  %v1120_v30 = vpop.xlane.xlu0 %1119 }
 0x562   :  { %v1847_v28 = vpop.f32.mrb[13].mxu0  ;;  %2051 = vpow.bf16 %v1167_v5  ;;  %v1157_v2 = vpack.c.bf16 %v1144_v27, %v1143_v1  ;;  %v1145_v32 = vsub.f32 %v2453_v61, %v1120_v30 }
 0x563   :  { %v2564_v31 = vpop.f32.mrb[14].mxu0  ;;  %v1122_v11 = vpop.xlane.xlu1 %1121 }
 0x564   :  { %v1848_v38 = vpop.f32.mrb[15].mxu0  ;;  %v1170_v40 = vmul.bf16 1069105081, %v1157_v2  ;;  %v1146_v42 = vsub.f32 %v2457_v37, %v1122_v11 }
 0x566   :  { %2053 = vpow.bf16 %v1170_v40  ;;  %v1158_v47 = vpack.c.bf16 %v1146_v42, %v1145_v32 }
 0x567   :  { %v1124_v3 = vpop.xlane.xlu0 %1123 }
 0x568   :  { %v1173_v37 = vmul.bf16 1069105081, %v1158_v47  ;;  %v1147_v54 = vsub.f32 %v2463_v57, %v1124_v3 }
 0x569   :  { %v2050_v34 = vpop.eup %2049  ;;  %v1126_v36 = vpop.xlane.xlu1 %1125 }
 0x56a   :  { %v2567_v39 = vpop.f32.mrb[16].mxu0  ;;  %1926 = vmatpush3.bf16.xpose.msra.mxu0 %v2050_v34  ;;  %v1148_v52 = vsub.f32 %v2467_v49, %v1126_v36  ;;  %2055 = vpow.bf16 %v1173_v37 }
 0x56b   :  { %v1851_v41 = vpop.f32.mrb[17].mxu0  ;;  %v1128_v44 = vpop.xlane.xlu0 %1127  ;;  %1927 = vmatprep.subr.bf16.mxu0 %v2089_v0 }
 0x56c   :  { %v2571_v43 = vpop.f32.mrb[18].mxu0  ;;  %v1159_v14 = vpack.c.bf16 %v1148_v52, %v1147_v54  ;;  %v1149_v57 = vsub.f32 %v2470_v50, %v1128_v44 }
 0x56d   :  { %v1852_v45 = vpop.f32.mrb[19].mxu0  ;;  %v1130_v46 = vpop.xlane.xlu1 %1129 }
 0x56e   :  { %v2052_v51 = vpop.eup %2051  ;;  %v1176_v21 = vmul.bf16 1069105081, %v1159_v14  ;;  %v1150_v49 = vsub.f32 %v2473_v48, %v1130_v46 }
 0x56f   :  { %v1132_v12 = vpop.xlane.xlu0 %1131 }
 0x570   :  { %2057 = vpow.bf16 %v1176_v21  ;;  %v1160_v26 = vpack.c.bf16 %v1150_v49, %v1149_v57  ;;  %v1151_v40 = vsub.f32 %v2489_v20, %v1132_v12 }
 0x571   :  { %v1134_v8 = vpop.xlane.xlu1 %1133  ;;  %v2575_v58 = vpop.f32.mrb[20].mxu0 }
 0x572   :  { %1928 = vmatpush3.bf16.xpose.msra.mxu0 %v2052_v51  ;;  %v1855_v60 = vpop.f32.mrb[21].mxu0  ;;  %v2054_v59 = vpop.eup %2053  ;;  %v1179_v2 = vmul.bf16 1069105081, %v1160_v26  ;;  %v1152_v3 = vsub.f32 %v2499_v25, %v1134_v8 }
 0x573   :  { %1929 = vmatprep.subr.bf16.mxu0 %v2089_v0  ;;  %v2579_v62 = vpop.f32.mrb[22].mxu0  ;;  %v1136_v19 = vpop.xlane.xlu0 %1135 }
 0x574   :  { %v1856_v61 = vpop.f32.mrb[23].mxu0  ;;  %2059 = vpow.bf16 %v1179_v2  ;;  %v1161_v32 = vpack.c.bf16 %v1152_v3, %v1151_v40  ;;  %v1153_v60 = vsub.f32 %v2482_v10, %v1136_v19 }
 0x575   :  { %v1138_v16 = vpop.xlane.xlu1 %1137  ;;  %v2056_v38 = vpop.eup %2055  ;;  %2061 = vrcp.f32 %v2575_v58 }
 0x576   :  { %v1182_v8 = vmul.bf16 1069105081, %v1161_v32  ;;  %v1154_v20 = vsub.f32 %v2495_v23, %v1138_v16 }
 0x578   :  { %2063 = vpow.bf16 %v1182_v8  ;;  %v1162_v14 = vpack.c.bf16 %v1154_v20, %v1153_v60 }
 0x579   :  { %v2582_v29 = vpop.permute.xlu1 %532  ;;  %2065 = vrcp.f32 %v2374_v15 }
 0x57a   :  { %1930 = vmatpush3.bf16.xpose.msra.mxu0 %v2054_v59  ;;  %v556_v7 = vmul.f32 %v2582_v29, %v2564_v31  ;;  %v764_v22 = vmul.f32 %v2368_v9, %v2582_v29 }
 0x57b   :  { %v2587_v24 = vpop.permute.xlu0 %527  ;;  %1931 = vmatprep.subr.bf16.mxu0 %v2089_v0  ;;  %v2058_v46 = vpop.eup %2057 }
 0x57c   :  { %v763_v4 = vmul.f32 %v2366_v6, %v2587_v24  ;;  %v555_v48 = vmul.f32 %v2587_v24, %v2561_v17 }
 0x57d   :  { %v2596_v35 = vpop.permute.xlu1 %537 }
 0x57e   :  { %v769_v5 = vadd.f32 %v764_v22, %v763_v4  ;;  %v765_v50 = vmul.f32 %v2370_v63, %v2596_v35  ;;  %v561_v27 = vadd.f32 %v556_v7, %v555_v48  ;;  %v557_v28 = vmul.f32 %v2596_v35, %v2567_v39 }
 0x57f   :  { %v2060_v49 = vpop.eup %2059  ;;  %v1185_v7 = vmul.bf16 1069105081, %v1162_v14 }
 0x580   :  { %v770_v30 = vadd.f32 %v769_v5, %v765_v50  ;;  %v562_v1 = vadd.f32 %v561_v27, %v557_v28  ;;  %v2062_v26 = vpop.eup %2061 }
 0x581   :  { %v2602_v11 = vpop.permute.xlu1 %542  ;;  %2067 = vpow.bf16 %v1185_v7 }
 0x582   :  { %v766_v34 = vmul.f32 %v2372_v13, %v2602_v11  ;;  %1932 = vmatpush3.bf16.xpose.msra.mxu0 %v2056_v38  ;;  %v558_v36 = vmul.f32 %v2602_v11, %v2571_v43 }
 0x583   :  { %1933 = vmatprep.subr.bf16.mxu0 %v2089_v0  ;;  %v2064_v27 = vpop.eup %2063 }
 0x584   :  { %v771_v42 = vadd.f32 %v770_v30, %v766_v34  ;;  %v563_v41 = vadd.f32 %v562_v1, %v558_v36  ;;  %v2066_v28 = vpop.eup %2065 }
 0x585   :  { %v2611_v44 = vpop.permute.xlu1 %547 }
 0x586   :  { %v767_v25 = vmul.f32 %v2374_v15, %v2611_v44  ;;  %v559_v45 = vmul.f32 %v2611_v44, %v2575_v58 }
 0x588   :  { %v772_v47 = vadd.f32 %v771_v42, %v767_v25  ;;  %v564_v51 = vadd.f32 %v563_v41, %v559_v45  ;;  %v581_v41 = vshrl.u32 %v32_v33, 7 }
 0x589   :  { %v2617_v52 = vpop.permute.xlu1 %552 }
 0x58a   :  { %v768_v12 = vmul.f32 %v2376_v18, %v2617_v52  ;;  %1934 = vmatpush3.bf16.xpose.msra.mxu0 %v2058_v46  ;;  %v560_v37 = vmul.f32 %v2617_v52, %v2579_v62  ;;  %v2637_v32 = vsub.s32 0, %v581_v41 }
 0x58b   :  { %1935 = vmatprep.subr.bf16.mxu0 %v2089_v0 }
 0x58c   :  { %v773_v54 = vadd.f32 %v772_v47, %v768_v12  ;;  %v565_v61 = vadd.f32 %v564_v51, %v560_v37  ;;  %v2068_v3 = vpop.eup %2067 }
 0x58e   :  { %v774_v59 = vrot.slane %v773_v54, 4  ;;  %v566_v21 = vrot.slane %v565_v61, 4 }
 0x590   :  { %v775_v23 = vadd.f32 %v774_v59, %v773_v54  ;;  %v567_v16 = vadd.f32 %v566_v21, %v565_v61 }
 0x592   :  { %v776_v57 = vrot.slane %v775_v23, 2  ;;  %1936 = vmatpush3.bf16.xpose.msra.mxu0 %v2060_v49  ;;  %v568_v22 = vrot.slane %v567_v16, 2 }
 0x593   :  { %1937 = vmatprep.subr.bf16.mxu0 %v2089_v0 }
 0x594   :  { %v777_v10 = vadd.f32 %v776_v57, %v775_v23  ;;  %v569_v19 = vadd.f32 %v568_v22, %v567_v16 }
 0x596   :  { %v778_v4 = vrot.slane %v777_v10, 1  ;;  %v570_v48 = vrot.slane %v569_v19, 1 }
 0x598   :  { %v779_v5 = vadd.f32 %v778_v4, %v777_v10  ;;  %v571_v50 = vadd.f32 %v570_v48, %v569_v19 }
 0x59a   :  { %v780_v30 = vmul.f32 %v2066_v28, %v779_v5  ;;  %1938 = vmatpush3.bf16.xpose.msra.mxu0 %v2064_v27  ;;  %v572_v1 = vmul.f32 %v2062_v26, %v571_v50 }
 0x59b   :  { %1939 = vmatprep.subr.bf16.mxu0 %v2089_v0 }
 0x59c   :  { %v1555_v38 = vmul.f32 -1.442695, %v780_v30  ;;  %v1548_v2 = vmul.f32 -1.442695, %v572_v1 }
 0x59e   :  { %2069 = vpow2.f32 %v1555_v38 }
 0x59f   :  { %2071 = vpow2.f32 %v1548_v2 }
 0x5a2   :  { %1940 = vmatpush3.bf16.xpose.msra.mxu0 %v2068_v3 }
 0x5a8   :  { %v2070_v34 = vpop.eup %2069 }
 0x5a9   :  { %v2072_v36 = vpop.eup %2071  ;;  %v784_v40 = vadd.f32 1.0, %v2070_v34  ;;  %1942 = vmatmul.mubr.bf16.vlgmr.msra.gmra.mrb[24].mxu0 %v2307_v53 }
 0x5aa   :  { %1945 = vmatprep.mubr.msk.bf16.mxu0 %vm2090_vm0, %v2089_v0  ;;  %v576_v42 = vadd.f32 1.0, %v2072_v36 }
 0x5ab   :  { %2073 = vrcp.f32 %v784_v40 }
 0x5ac   :  { %2075 = vrcp.f32 %v576_v42 }
 0x5b1   :  { %1946 = vmatmul.mubr.bf16.gmra.mrb[28].mxu0 %v2317_v55 }
 0x5b2   :  { %1949 = vmatprep.mubr.msk.bf16.mxu0 %vm2090_vm0, %v2089_v0 }
 0x5b5   :  { %v2074_v25 = vpop.eup %2073 }
 0x5b6   :  { %v2076_v45 = vpop.eup %2075  ;;  %v787_v46 = vmul.f32 %v2074_v25, %v2066_v28 }
 0x5b7   :  { %v579_v47 = vmul.f32 %v2076_v45, %v2062_v26 }
 0x5b8   :  { %v791_v53 = vrot.slane %v787_v46, %v2637_v32 }
 0x5b9   :  { %1950 = vmatmul.mubr.bf16.gmra.mrb[32].mxu0 %v2324_v56  ;;  %v583_v51 = vrot.slane %v579_v47, %v2637_v32 }
 0x5ba   :  { %v792_v8 = vmul.f32 %v791_v53, %v2366_v6  ;;  %v793_v33 = vmul.f32 %v791_v53, %v2368_v9  ;;  %v794_v55 = vmul.f32 %v791_v53, %v2370_v63  ;;  %v795_v0 = vmul.f32 %v791_v53, %v2372_v13 }
 0x5bb   :  { %v584_v20 = vmul.f32 %v583_v51, %v2561_v17  ;;  %v585_v12 = vmul.f32 %v583_v51, %v2564_v31  ;;  %v586_v37 = vmul.f32 %v583_v51, %v2567_v39  ;;  %v587_v60 = vmul.f32 %v583_v51, %v2571_v43 }
 0x5bc   :  { %v588_v56 = vmul.f32 %v583_v51, %v2575_v58  ;;  %v589_v54 = vmul.f32 %v583_v51, %v2579_v62  ;;  %v796_v6 = vmul.f32 %v791_v53, %v2374_v15  ;;  %v797_v9 = vmul.f32 %v791_v53, %v2376_v18 }
 0x5bd   :  { %v1644_v61 = vpack.c.bf16 %v585_v12, %v584_v20  ;;  %v1649_v63 = vpack.c.bf16 %v587_v60, %v586_v37  ;;  %v1659_v14 = vpack.c.bf16 %v793_v33, %v792_v8  ;;  %v1664_v13 = vpack.c.bf16 %v795_v0, %v794_v55 }
 0x5be   :  { %v1654_v59 = vpack.c.bf16 %v589_v54, %v588_v56  ;;  %v1669_v17 = vpack.c.bf16 %v797_v9, %v796_v6 }
 0x5bf   :  { %1645 = vst [vmem:[%s2708_s5] sm:$0xff] %v1644_v61   ;;  %1701 = vst [vmem:[%s2708_s5 + $0x8] sm:$0xff] %v1649_v63  }
 0x5c0   :  { %1660 = vst [vmem:[%s2709_s4] sm:$0xff] %v1659_v14   ;;  %1703 = vst [vmem:[%s2709_s4 + $0x8] sm:$0xff] %v1664_v13  }
 0x5c1   :  { %1702 = vst [vmem:[%s2708_s5 + $0x10] sm:$0xff] %v1654_v59   ;;  %1704 = vst [vmem:[%s2709_s4 + $0x10] sm:$0xff] %v1669_v17  }
 0x5fa   :  { %v1430_v15 = vpop.f32.mrb[56].mxu1 }
 0x5fb   :  { %v1454_v18 = vmul.f32 %v1430_v15, %v2587_v24  ;;  %v1971_v31 = vpop.f32.mrb[57].mxu1 }
 0x5fc   :  { %v1433_v39 = vpop.f32.mrb[58].mxu1 }
 0x5fd   :  { %v1455_v43 = vmul.f32 %v1433_v39, %v2582_v29  ;;  %v1972_v58 = vpop.f32.mrb[59].mxu1 }
 0x5ff   :  { %v1460_v62 = vadd.f32 %v1455_v43, %v1454_v18 }
 0x602   :  { %v1438_v21 = vpop.f32.mrb[60].mxu1 }
 0x603   :  { %v1456_v23 = vmul.f32 %v1438_v21, %v2596_v35  ;;  %v1975_v16 = vpop.f32.mrb[61].mxu1 }
 0x604   :  { %v1441_v49 = vpop.f32.mrb[62].mxu1 }
 0x605   :  { %v1461_v7 = vadd.f32 %v1460_v62, %v1456_v23  ;;  %v1457_v57 = vmul.f32 %v1441_v49, %v2602_v11  ;;  %v1976_v22 = vpop.f32.mrb[63].mxu1 }
 0x607   :  { %v1462_v10 = vadd.f32 %v1461_v7, %v1457_v57 }
 0x60a   :  { %v1446_v19 = vpop.f32.mrb[64].mxu1 }
 0x60b   :  { %v1458_v4 = vmul.f32 %v1446_v19, %v2611_v44  ;;  %v1979_v48 = vpop.f32.mrb[65].mxu1  ;;  %2077 = vrcp.f32 %v1446_v19 }
 0x60c   :  { %v1449_v26 = vpop.f32.mrb[66].mxu1 }
 0x60d   :  { %v1463_v5 = vadd.f32 %v1462_v10, %v1458_v4  ;;  %v1459_v50 = vmul.f32 %v1449_v26, %v2617_v52  ;;  %v1980_v27 = vpop.f32.mrb[67].mxu1 }
 0x60f   :  { %v1464_v28 = vadd.f32 %v1463_v5, %v1459_v50 }
 0x611   :  { %v1465_v30 = vrot.slane %v1464_v28, 4 }
 0x613   :  { %v1466_v1 = vadd.f32 %v1465_v30, %v1464_v28 }
 0x615   :  { %v1467_v38 = vrot.slane %v1466_v1, 2  ;;  %v2078_v34 = vpop.eup %2077 }
 0x617   :  { %v1468_v2 = vadd.f32 %v1467_v38, %v1466_v1 }
 0x619   :  { %v1469_v3 = vrot.slane %v1468_v2, 1 }
 0x61b   :  { %v1470_v36 = vadd.f32 %v1469_v3, %v1468_v2 }
 0x61d   :  { %v1471_v40 = vmul.f32 %v2078_v34, %v1470_v36 }
 0x61f   :  { %v1604_v42 = vmul.f32 -1.442695, %v1471_v40 }
 0x621   :  { %2079 = vpow2.f32 %v1604_v42 }
 0x62b   :  { %v2080_v41 = vpop.eup %2079 }
 0x62c   :  { %v1475_v25 = vadd.f32 1.0, %v2080_v41 }
 0x62e   :  { %2081 = vrcp.f32 %v1475_v25 }
 0x638   :  { %v2082_v45 = vpop.eup %2081 }
 0x639   :  { %v1478_v46 = vmul.f32 %v2082_v45, %v2078_v34 }
 0x63b   :  { %v1482_v47 = vrot.slane %v1478_v46, %v2637_v32 }
 0x63d   :  { %v1483_v53 = vmul.f32 %v1482_v47, %v1430_v15  ;;  %v1484_v51 = vmul.f32 %v1482_v47, %v1433_v39  ;;  %v1485_v8 = vmul.f32 %v1482_v47, %v1438_v21  ;;  %v1486_v33 = vmul.f32 %v1482_v47, %v1441_v49 }
 0x63e   :  { %v1487_v55 = vmul.f32 %v1482_v47, %v1446_v19  ;;  %v1488_v0 = vmul.f32 %v1482_v47, %v1449_v26 }
 0x63f   :  { %v1689_v20 = vpack.c.bf16 %v1484_v51, %v1483_v53  ;;  %v1694_v12 = vpack.c.bf16 %v1486_v33, %v1485_v8 }
 0x640   :  { %v1699_v37 = vpack.c.bf16 %v1488_v0, %v1487_v55 }
 0x641   :  { %1708 = vst [vmem:[%s2709_s4 + $0x18] sm:$0xff] %v1689_v20   ;;  %1709 = vst [vmem:[%s2709_s4 + $0x20] sm:$0xff] %v1694_v12  }
 0x642   :  { %1710 = vst [vmem:[%s2709_s4 + $0x28] sm:$0xff] %v1699_v37  }
 0x67c   :  { %v1221_v60 = vpop.f32.mrb[24].mxu0 }
 0x67d   :  { %v1943_v56 = vpop.f32.mrb[25].mxu0  ;;  %v1245_v6 = vmul.f32 %v1221_v60, %v2587_v24 }
 0x67e   :  { %v1224_v54 = vpop.f32.mrb[26].mxu0 }
 0x67f   :  { %v1246_v9 = vmul.f32 %v1224_v54, %v2582_v29  ;;  %v1944_v61 = vpop.f32.mrb[27].mxu0 }
 0x681   :  { %v1251_v63 = vadd.f32 %v1246_v9, %v1245_v6 }
 0x684   :  { %v1229_v14 = vpop.f32.mrb[28].mxu0 }
 0x685   :  { %v1247_v13 = vmul.f32 %v1229_v14, %v2596_v35  ;;  %v1947_v59 = vpop.f32.mrb[29].mxu0 }
 0x686   :  { %v1232_v17 = vpop.f32.mrb[30].mxu0 }
 0x687   :  { %v1252_v15 = vadd.f32 %v1251_v63, %v1247_v13  ;;  %v1248_v18 = vmul.f32 %v1232_v17, %v2602_v11  ;;  %v1948_v31 = vpop.f32.mrb[31].mxu0 }
 0x689   :  { %v1253_v39 = vadd.f32 %v1252_v15, %v1248_v18 }
 0x68c   :  { %v1237_v43 = vpop.f32.mrb[32].mxu0 }
 0x68d   :  { %v1249_v58 = vmul.f32 %v1237_v43, %v2611_v44  ;;  %v1951_v62 = vpop.f32.mrb[33].mxu0  ;;  %2083 = vrcp.f32 %v1237_v43 }
 0x68e   :  { %v1240_v21 = vpop.f32.mrb[34].mxu0 }
 0x68f   :  { %v1254_v24 = vadd.f32 %v1253_v39, %v1249_v58  ;;  %v1250_v29 = vmul.f32 %v1240_v21, %v2617_v52  ;;  %v1952_v23 = vpop.f32.mrb[35].mxu0 }
 0x691   :  { %v1255_v16 = vadd.f32 %v1254_v24, %v1250_v29 }
 0x693   :  { %v1256_v49 = vrot.slane %v1255_v16, 4 }
 0x695   :  { %v1257_v35 = vadd.f32 %v1256_v49, %v1255_v16 }
 0x697   :  { %v1258_v7 = vrot.slane %v1257_v35, 2  ;;  %v2084_v11 = vpop.eup %2083 }
 0x699   :  { %v1259_v57 = vadd.f32 %v1258_v7, %v1257_v35 }
 0x69b   :  { %v1260_v22 = vrot.slane %v1259_v57, 1 }
 0x69d   :  { %v1261_v10 = vadd.f32 %v1260_v22, %v1259_v57 }
 0x69f   :  { %v1262_v19 = vmul.f32 %v2084_v11, %v1261_v10 }
 0x6a1   :  { %v1591_v4 = vmul.f32 -1.442695, %v1262_v19 }
 0x6a3   :  { %2085 = vpow2.f32 %v1591_v4 }
 0x6ad   :  { %v2086_v48 = vpop.eup %2085 }
 0x6ae   :  { %v1266_v44 = vadd.f32 1.0, %v2086_v48 }
 0x6b0   :  { %2087 = vrcp.f32 %v1266_v44 }
 0x6ba   :  { %v2088_v26 = vpop.eup %2087 }
 0x6bb   :  { %v1269_v5 = vmul.f32 %v2088_v26, %v2084_v11 }
 0x6bd   :  { %v1273_v52 = vrot.slane %v1269_v5, %v2637_v32 }
 0x6bf   :  { %v1274_v50 = vmul.f32 %v1273_v52, %v1221_v60  ;;  %v1275_v27 = vmul.f32 %v1273_v52, %v1224_v54  ;;  %v1276_v28 = vmul.f32 %v1273_v52, %v1229_v14  ;;  %v1277_v30 = vmul.f32 %v1273_v52, %v1232_v17 }
 0x6c0   :  { %v1278_v1 = vmul.f32 %v1273_v52, %v1237_v43  ;;  %v1279_v38 = vmul.f32 %v1273_v52, %v1240_v21 }
 0x6c1   :  { %v1674_v2 = vpack.c.bf16 %v1275_v27, %v1274_v50  ;;  %v1679_v3 = vpack.c.bf16 %v1277_v30, %v1276_v28 }
 0x6c2   :  { %v1684_v34 = vpack.c.bf16 %v1279_v38, %v1278_v1 }
 0x6c3   :  { %1705 = vst [vmem:[%s2708_s5 + $0x18] sm:$0xff] %v1674_v2   ;;  %1706 = vst [vmem:[%s2708_s5 + $0x20] sm:$0xff] %v1679_v3  }
 0x6c4   :  { %1707 = vst [vmem:[%s2708_s5 + $0x28] sm:$0xff] %v1684_v34  }

</bundles_post_ra>
